<compile_context>
chip_gen: v7x
topology: tpu7x:2x2x1
jax: 0.10.0
libtpu: 0.0.40
codegen_flags: <defaults>
</compile_context>

<pallas_src>
import functools
import math

import jax
import jax.numpy as jnp
from jax import lax
from jax.experimental import pallas as pl
from jax.experimental.pallas import tpu as pltpu


def _layer_norm(x, w, b, eps=1e-5):
    mean = jnp.mean(x, axis=-1, keepdims=True)
    var = jnp.mean((x - mean) ** 2, axis=-1, keepdims=True)
    return (x - mean) * lax.rsqrt(var + eps) * w + b


def transformer_network_kernel(
    x_ref,
    heads_w_ref, heads_b_ref,      # (B, H, D, D)  (B, H, 1, D)   repeat folded
    red_w_ref, red_b_ref,          # (B, H, D, D)  (B, 1, D)
    ff1_w_ref, ff1_b_ref,          # (B, D, D)     (B, 1, D)
    ff2_w_ref, ff2_b_ref,          # (B, D, D)     (B, 1, D)
    ln_w_ref, ln_b_ref,            # (B, 1, D)     (B, 1, D)
    out_ref,
    *, num_blocks, num_heads, d,
):
    x = x_ref[...].astype(jnp.float32)                     # (N, D)
    n = x.shape[0]

    # Causal mask: event i attends to events 0..i (matches the reference's
    # softmax(inner_product[i, 0:i+1]) loop). Shared by all blocks / heads.
    row_ids = lax.broadcasted_iota(jnp.int32, (n, n), 0)
    col_ids = lax.broadcasted_iota(jnp.int32, (n, n), 1)
    causal = (col_ids <= row_ids)[None, :, :]               # (1, N, N)
    scale = 1.0 / math.sqrt(d)

    for blk in range(num_blocks):                           # static unroll
        heads_w = heads_w_ref[blk].astype(jnp.float32)      # (H, D, D)
        heads_b = heads_b_ref[blk].astype(jnp.float32)      # (H, 1, D)
        red_w = red_w_ref[blk].astype(jnp.float32)          # (H, D, D)
        red_b = red_b_ref[blk].astype(jnp.float32)          # (1, D)
        ff1_w = ff1_w_ref[blk].astype(jnp.float32)
        ff1_b = ff1_b_ref[blk].astype(jnp.float32)
        ff2_w = ff2_w_ref[blk].astype(jnp.float32)
        ff2_b = ff2_b_ref[blk].astype(jnp.float32)
        ln_w = ln_w_ref[blk].astype(jnp.float32)            # (1, D)
        ln_b = ln_b_ref[blk].astype(jnp.float32)

        # Per-head projection of the (repeat-folded) input -> (H, N, D).
        xb = jnp.broadcast_to(x[None], (num_heads, n, d))
        proj = jnp.einsum('hnd,hde->hne', xb, heads_w,
                          preferred_element_type=jnp.float32) + heads_b

        # Batched causal self-attention over all heads at once.
        scores = jnp.einsum('hnd,hmd->hnm', proj, proj,
                            preferred_element_type=jnp.float32) * scale
        scores = jnp.where(causal, scores, -1e30)
        scores = scores - jnp.max(scores, axis=-1, keepdims=True)
        p = jnp.exp(scores)
        p = p * pl.reciprocal(jnp.sum(p, axis=-1, keepdims=True), approx=True)
        attn = jnp.einsum('hnm,hmd->hnd', p, proj,
                          preferred_element_type=jnp.float32)  # (H, N, D)

        # Residual + (shared) LayerNorm for every head in one shot.
        recon = _layer_norm(attn + x[None], ln_w, ln_b)        # (H, N, D)

        # Head-major linear reducer: sum_h recon[h] @ red_w[h]  -> (N, D)
        per_head = jnp.einsum('hnd,hde->hne', recon, red_w,
                              preferred_element_type=jnp.float32)
        attn_out = jnp.sum(per_head, axis=0) + red_b

        # Feed-forward block + residual LayerNorm (same LayerNorm params).
        h1 = jnp.maximum(
            jnp.dot(attn_out, ff1_w, preferred_element_type=jnp.float32) + ff1_b,
            0.0)
        h2 = jnp.dot(h1, ff2_w, preferred_element_type=jnp.float32) + ff2_b
        x = _layer_norm(h2 + attn_out, ln_w, ln_b)

    out_ref[...] = x.astype(out_ref.dtype)


def transformer_network(x, stacked, *, num_blocks, num_heads, d):
    n, _ = x.shape
    inputs = (
        x,
        stacked["heads_w"], stacked["heads_b"],
        stacked["red_w"], stacked["red_b"],
        stacked["ff1_w"], stacked["ff1_b"],
        stacked["ff2_w"], stacked["ff2_b"],
        stacked["ln_w"], stacked["ln_b"],
    )
    kernel = functools.partial(transformer_network_kernel,
                               num_blocks=num_blocks, num_heads=num_heads, d=d)
    vmem = pl.BlockSpec(memory_space=pltpu.MemorySpace.VMEM)
    # Tiny problem (N=8, D=16): everything fits in VMEM, single invocation,
    # no grid. TODO(synk): for large N/D add a query-tiled grid with
    # dimension_semantics=("parallel",...) and a flash-style online softmax.
    return pl.pallas_call(
        kernel,
        out_shape=jax.ShapeDtypeStruct((n, d), x.dtype),
        in_specs=[vmem] * len(inputs),
        out_specs=vmem,
    )(*inputs)


def init_block_params_torch(key, num_heads, d):
    """Parameters in PyTorch nn.Linear layout: weight = (out, in), bias = (out,)."""
    hd = num_heads * d
    ks = jax.random.split(key, 8)
    s = 0.1
    return {
        "heads_w": s * jax.random.normal(ks[0], (hd, hd), jnp.float32),
        "heads_b": s * jax.random.normal(ks[1], (hd,), jnp.float32),
        "red_w":   s * jax.random.normal(ks[2], (d, hd), jnp.float32),
        "red_b":   s * jax.random.normal(ks[3], (d,), jnp.float32),
        "ff1_w":   s * jax.random.normal(ks[4], (d, d), jnp.float32),
        "ff1_b":   s * jax.random.normal(ks[5], (d,), jnp.float32),
        "ff2_w":   s * jax.random.normal(ks[6], (d, d), jnp.float32),
        "ff2_b":   s * jax.random.normal(ks[7], (d,), jnp.float32),
        "ln_w":    jnp.ones((d,), jnp.float32),
        "ln_b":    jnp.zeros((d,), jnp.float32),
    }


def prepare_params(block_params_list, *, num_heads, d):
    """PyTorch-layout per-block params -> fused-kernel layout (stacked over blocks).

    heads: fold the `input.repeat(1, H)` into the weight
           ([x,..,x] @ W.T == x @ sum_h W.T[h*D:(h+1)*D, :]) and store head-major.
    """
    hw, hb, rw, rb = [], [], [], []
    f1w, f1b, f2w, f2b, lw, lb = [], [], [], [], [], []
    for p in block_params_list:
        w_t = p["heads_w"].T                                         # (in=H*D, out=H*D)
        w_fold = w_t.reshape(num_heads, d, num_heads * d).sum(axis=0)  # (D, H*D)
        hw.append(w_fold.reshape(d, num_heads, d).transpose(1, 0, 2))  # (H, D, D)
        hb.append(p["heads_b"].reshape(num_heads, 1, d))               # (H, 1, D)
        rw.append(p["red_w"].T.reshape(num_heads, d, d))               # (H, D, D)
        rb.append(p["red_b"].reshape(1, d))
        f1w.append(p["ff1_w"].T)
        f1b.append(p["ff1_b"].reshape(1, d))
        f2w.append(p["ff2_w"].T)
        f2b.append(p["ff2_b"].reshape(1, d))
        lw.append(p["ln_w"].reshape(1, d))
        lb.append(p["ln_b"].reshape(1, d))
    stk = lambda xs: jnp.stack(xs, axis=0)
    return {
        "heads_w": stk(hw), "heads_b": stk(hb),
        "red_w": stk(rw), "red_b": stk(rb),
        "ff1_w": stk(f1w), "ff1_b": stk(f1b),
        "ff2_w": stk(f2w), "ff2_b": stk(f2b),
        "ln_w": stk(lw), "ln_b": stk(lb),
    }


if __name__ == "__main__":
    NUM_BLOCKS = 3
    NUM_HEADS = 4
    INPUT_SIZE = 16     # feature dim D (module default)
    NUM_EVENTS = 8      # sequence length N

    root = jax.random.PRNGKey(0)
    x_key, *blk_keys = jax.random.split(root, NUM_BLOCKS + 1)
    x = jax.random.normal(x_key, (NUM_EVENTS, INPUT_SIZE), jnp.float32)
    torch_like = [init_block_params_torch(k, NUM_HEADS, INPUT_SIZE) for k in blk_keys]
    stacked = prepare_params(torch_like, num_heads=NUM_HEADS, d=INPUT_SIZE)

    fwd = jax.jit(functools.partial(transformer_network,
                                    num_blocks=NUM_BLOCKS,
                                    num_heads=NUM_HEADS,
                                    d=INPUT_SIZE))
    out = fwd(x, stacked)
    jax.block_until_ready(out)
    assert out.shape == (NUM_EVENTS, INPUT_SIZE)
    assert bool(jnp.all(jnp.isfinite(out)))
    print("KERNEL_OK")
</pallas_src>

<mosaic_0001>
module attributes {stable_mosaic.version = 11 : i64} {
  func.func @transformer_network_kernel(%arg0: memref<8x16xf32, #tpu.memory_space<vmem>>, %arg1: memref<3x4x16x16xf32, #tpu.memory_space<vmem>>, %arg2: memref<3x4x1x16xf32, #tpu.memory_space<vmem>>, %arg3: memref<3x4x16x16xf32, #tpu.memory_space<vmem>>, %arg4: memref<3x1x16xf32, #tpu.memory_space<vmem>>, %arg5: memref<3x16x16xf32, #tpu.memory_space<vmem>>, %arg6: memref<3x1x16xf32, #tpu.memory_space<vmem>>, %arg7: memref<3x16x16xf32, #tpu.memory_space<vmem>>, %arg8: memref<3x1x16xf32, #tpu.memory_space<vmem>>, %arg9: memref<3x1x16xf32, #tpu.memory_space<vmem>>, %arg10: memref<3x1x16xf32, #tpu.memory_space<vmem>>, %arg11: memref<8x16xf32, #tpu.memory_space<vmem>>) attributes {dimension_semantics = [], scalar_prefetch = 0 : i64, scratch_operands = 0 : i64, tpu.core_type = #tpu.core_type<tc>} {
    %c0 = arith.constant 0 : index
    %c0_0 = arith.constant 0 : index
    %0 = vector.load %arg0[%c0, %c0_0] : memref<8x16xf32, #tpu.memory_space<vmem>>, vector<8x16xf32>
    %1 = tpu.iota {dimensions = array<i32: 0>} : vector<8x8xi32>
    %2 = tpu.iota {dimensions = array<i32: 1>} : vector<8x8xi32>
    %3 = arith.cmpi sle, %2, %1 : vector<8x8xi32>
    %4 = vector.shape_cast %3 : vector<8x8xi1> to vector<1x8x8xi1>
    %c0_1 = arith.constant 0 : index
    %c0_2 = arith.constant 0 : index
    %c0_3 = arith.constant 0 : index
    %c0_4 = arith.constant 0 : index
    %5 = vector.load %arg1[%c0_1, %c0_2, %c0_3, %c0_4] : memref<3x4x16x16xf32, #tpu.memory_space<vmem>>, vector<1x4x16x16xf32>
    %6 = vector.shape_cast %5 : vector<1x4x16x16xf32> to vector<4x16x16xf32>
    %c0_5 = arith.constant 0 : index
    %c0_6 = arith.constant 0 : index
    %c0_7 = arith.constant 0 : index
    %c0_8 = arith.constant 0 : index
    %7 = vector.load %arg2[%c0_5, %c0_6, %c0_7, %c0_8] : memref<3x4x1x16xf32, #tpu.memory_space<vmem>>, vector<1x4x1x16xf32>
    %8 = vector.shape_cast %7 : vector<1x4x1x16xf32> to vector<4x1x16xf32>
    %c0_9 = arith.constant 0 : index
    %c0_10 = arith.constant 0 : index
    %c0_11 = arith.constant 0 : index
    %c0_12 = arith.constant 0 : index
    %9 = vector.load %arg3[%c0_9, %c0_10, %c0_11, %c0_12] : memref<3x4x16x16xf32, #tpu.memory_space<vmem>>, vector<1x4x16x16xf32>
    %10 = vector.shape_cast %9 : vector<1x4x16x16xf32> to vector<4x16x16xf32>
    %c0_13 = arith.constant 0 : index
    %c0_14 = arith.constant 0 : index
    %c0_15 = arith.constant 0 : index
    %11 = vector.load %arg4[%c0_13, %c0_14, %c0_15] : memref<3x1x16xf32, #tpu.memory_space<vmem>>, vector<1x1x16xf32>
    %12 = vector.shape_cast %11 : vector<1x1x16xf32> to vector<1x16xf32>
    %c0_16 = arith.constant 0 : index
    %c0_17 = arith.constant 0 : index
    %c0_18 = arith.constant 0 : index
    %13 = vector.load %arg5[%c0_16, %c0_17, %c0_18] : memref<3x16x16xf32, #tpu.memory_space<vmem>>, vector<1x16x16xf32>
    %14 = vector.shape_cast %13 : vector<1x16x16xf32> to vector<16x16xf32>
    %c0_19 = arith.constant 0 : index
    %c0_20 = arith.constant 0 : index
    %c0_21 = arith.constant 0 : index
    %15 = vector.load %arg6[%c0_19, %c0_20, %c0_21] : memref<3x1x16xf32, #tpu.memory_space<vmem>>, vector<1x1x16xf32>
    %16 = vector.shape_cast %15 : vector<1x1x16xf32> to vector<1x16xf32>
    %c0_22 = arith.constant 0 : index
    %c0_23 = arith.constant 0 : index
    %c0_24 = arith.constant 0 : index
    %17 = vector.load %arg7[%c0_22, %c0_23, %c0_24] : memref<3x16x16xf32, #tpu.memory_space<vmem>>, vector<1x16x16xf32>
    %18 = vector.shape_cast %17 : vector<1x16x16xf32> to vector<16x16xf32>
    %c0_25 = arith.constant 0 : index
    %c0_26 = arith.constant 0 : index
    %c0_27 = arith.constant 0 : index
    %19 = vector.load %arg8[%c0_25, %c0_26, %c0_27] : memref<3x1x16xf32, #tpu.memory_space<vmem>>, vector<1x1x16xf32>
    %20 = vector.shape_cast %19 : vector<1x1x16xf32> to vector<1x16xf32>
    %c0_28 = arith.constant 0 : index
    %c0_29 = arith.constant 0 : index
    %c0_30 = arith.constant 0 : index
    %21 = vector.load %arg9[%c0_28, %c0_29, %c0_30] : memref<3x1x16xf32, #tpu.memory_space<vmem>>, vector<1x1x16xf32>
    %22 = vector.shape_cast %21 : vector<1x1x16xf32> to vector<1x16xf32>
    %c0_31 = arith.constant 0 : index
    %c0_32 = arith.constant 0 : index
    %c0_33 = arith.constant 0 : index
    %23 = vector.load %arg10[%c0_31, %c0_32, %c0_33] : memref<3x1x16xf32, #tpu.memory_space<vmem>>, vector<1x1x16xf32>
    %24 = vector.shape_cast %23 : vector<1x1x16xf32> to vector<1x16xf32>
    %25 = vector.shape_cast %0 : vector<8x16xf32> to vector<1x8x16xf32>
    %26 = vector.shape_cast %25 : vector<1x8x16xf32> to vector<1x8x16xf32>
    %27 = vector.broadcast %26 : vector<1x8x16xf32> to vector<4x8x16xf32>
    "tpu.trace_start"() <{level = 10 : i32, message = "hnd,hde->hne"}> : () -> ()
    %cst = arith.constant dense<0.000000e+00> : vector<4x8x16xf32>
    %28 = tpu.matmul %27, %6, %cst {dimension_numbers = #tpu.dot_dimension_numbers<[2], [1], [1], [2], [0, 0, 0, 1, 1, 2], [0], [0]>} : vector<4x8x16xf32>, vector<4x16x16xf32>, vector<4x8x16xf32> -> vector<4x8x16xf32>
    "tpu.trace_stop"() : () -> ()
    %29 = vector.broadcast %8 : vector<4x1x16xf32> to vector<4x8x16xf32>
    %30 = arith.addf %28, %29 : vector<4x8x16xf32>
    "tpu.trace_start"() <{level = 10 : i32, message = "hnd,hmd->hnm"}> : () -> ()
    %cst_34 = arith.constant dense<0.000000e+00> : vector<4x8x8xf32>
    %31 = tpu.matmul %30, %30, %cst_34 {dimension_numbers = #tpu.dot_dimension_numbers<[2], [2], [1], [1], [0, 0, 0, 1, 1, 1], [0], [0]>} : vector<4x8x16xf32>, vector<4x8x16xf32>, vector<4x8x8xf32> -> vector<4x8x8xf32>
    "tpu.trace_stop"() : () -> ()
    %cst_35 = arith.constant 2.500000e-01 : f32
    %32 = vector.broadcast %cst_35 : f32 to vector<4x8x8xf32>
    %33 = arith.mulf %31, %32 : vector<4x8x8xf32>
    %cst_36 = arith.constant -1.000000e+30 : f32
    %34 = vector.shape_cast %4 : vector<1x8x8xi1> to vector<1x8x8xi1>
    %35 = vector.broadcast %34 : vector<1x8x8xi1> to vector<4x8x8xi1>
    %36 = vector.broadcast %cst_36 : f32 to vector<4x8x8xf32>
    %37 = arith.select %35, %33, %36 : vector<4x8x8xi1>, vector<4x8x8xf32>
    %cst_37 = arith.constant dense<0xFF800000> : vector<4x8xf32>
    %38 = vector.multi_reduction <maximumf>, %37, %cst_37 [2] : vector<4x8x8xf32> to vector<4x8xf32>
    %39 = vector.shape_cast %38 : vector<4x8xf32> to vector<4x8x1xf32>
    %40 = vector.broadcast %39 : vector<4x8x1xf32> to vector<4x8x8xf32>
    %41 = arith.subf %37, %40 : vector<4x8x8xf32>
    %42 = math.exp %41 : vector<4x8x8xf32>
    %cst_38 = arith.constant dense<0.000000e+00> : vector<4x8xf32>
    %43 = vector.multi_reduction <add>, %42, %cst_38 [2] : vector<4x8x8xf32> to vector<4x8xf32>
    %44 = vector.shape_cast %43 : vector<4x8xf32> to vector<4x8x1xf32>
    %45 = tpu.reciprocal %44 {approx = true} : vector<4x8x1xf32> -> vector<4x8x1xf32>
    %46 = vector.broadcast %45 : vector<4x8x1xf32> to vector<4x8x8xf32>
    %47 = arith.mulf %42, %46 : vector<4x8x8xf32>
    "tpu.trace_start"() <{level = 10 : i32, message = "hnm,hmd->hnd"}> : () -> ()
    %cst_39 = arith.constant dense<0.000000e+00> : vector<4x8x16xf32>
    %48 = tpu.matmul %47, %30, %cst_39 {dimension_numbers = #tpu.dot_dimension_numbers<[2], [1], [1], [2], [0, 0, 0, 1, 1, 2], [0], [0]>} : vector<4x8x8xf32>, vector<4x8x16xf32>, vector<4x8x16xf32> -> vector<4x8x16xf32>
    "tpu.trace_stop"() : () -> ()
    %49 = vector.shape_cast %0 : vector<8x16xf32> to vector<1x8x16xf32>
    %50 = vector.broadcast %49 : vector<1x8x16xf32> to vector<4x8x16xf32>
    %51 = arith.addf %48, %50 : vector<4x8x16xf32>
    %cst_40 = arith.constant dense<0.000000e+00> : vector<4x8xf32>
    %52 = vector.multi_reduction <add>, %51, %cst_40 [2] : vector<4x8x16xf32> to vector<4x8xf32>
    %53 = vector.shape_cast %52 : vector<4x8xf32> to vector<4x8x1xf32>
    %cst_41 = arith.constant 1.600000e+01 : f32
    %54 = vector.broadcast %cst_41 : f32 to vector<4x8x1xf32>
    %55 = arith.divf %53, %54 : vector<4x8x1xf32>
    %56 = vector.broadcast %55 : vector<4x8x1xf32> to vector<4x8x16xf32>
    %57 = arith.subf %51, %56 : vector<4x8x16xf32>
    %58 = arith.mulf %57, %57 : vector<4x8x16xf32>
    %cst_42 = arith.constant dense<0.000000e+00> : vector<4x8xf32>
    %59 = vector.multi_reduction <add>, %58, %cst_42 [2] : vector<4x8x16xf32> to vector<4x8xf32>
    %60 = vector.shape_cast %59 : vector<4x8xf32> to vector<4x8x1xf32>
    %cst_43 = arith.constant 1.600000e+01 : f32
    %61 = vector.broadcast %cst_43 : f32 to vector<4x8x1xf32>
    %62 = arith.divf %60, %61 : vector<4x8x1xf32>
    %63 = vector.broadcast %55 : vector<4x8x1xf32> to vector<4x8x16xf32>
    %64 = arith.subf %51, %63 : vector<4x8x16xf32>
    %cst_44 = arith.constant 9.99999974E-6 : f32
    %65 = vector.broadcast %cst_44 : f32 to vector<4x8x1xf32>
    %66 = arith.addf %62, %65 : vector<4x8x1xf32>
    %67 = math.rsqrt %66 : vector<4x8x1xf32>
    %68 = vector.broadcast %67 : vector<4x8x1xf32> to vector<4x8x16xf32>
    %69 = arith.mulf %64, %68 : vector<4x8x16xf32>
    %70 = vector.shape_cast %22 : vector<1x16xf32> to vector<1x1x16xf32>
    %71 = vector.broadcast %70 : vector<1x1x16xf32> to vector<4x8x16xf32>
    %72 = arith.mulf %69, %71 : vector<4x8x16xf32>
    %73 = vector.shape_cast %24 : vector<1x16xf32> to vector<1x1x16xf32>
    %74 = vector.broadcast %73 : vector<1x1x16xf32> to vector<4x8x16xf32>
    %75 = arith.addf %72, %74 : vector<4x8x16xf32>
    "tpu.trace_start"() <{level = 10 : i32, message = "hnd,hde->hne"}> : () -> ()
    %cst_45 = arith.constant dense<0.000000e+00> : vector<4x8x16xf32>
    %76 = tpu.matmul %75, %10, %cst_45 {dimension_numbers = #tpu.dot_dimension_numbers<[2], [1], [1], [2], [0, 0, 0, 1, 1, 2], [0], [0]>} : vector<4x8x16xf32>, vector<4x16x16xf32>, vector<4x8x16xf32> -> vector<4x8x16xf32>
    "tpu.trace_stop"() : () -> ()
    %cst_46 = arith.constant dense<0.000000e+00> : vector<8x16xf32>
    %77 = vector.multi_reduction <add>, %76, %cst_46 [0] : vector<4x8x16xf32> to vector<8x16xf32>
    %78 = vector.broadcast %12 : vector<1x16xf32> to vector<8x16xf32>
    %79 = arith.addf %77, %78 : vector<8x16xf32>
    %cst_47 = arith.constant dense<0.000000e+00> : vector<8x16xf32>
    %80 = tpu.matmul %79, %14, %cst_47 {dimension_numbers = #tpu.dot_dimension_numbers<[1], [0], [0], [1], [0, 0, 1, 1], [], []>} : vector<8x16xf32>, vector<16x16xf32>, vector<8x16xf32> -> vector<8x16xf32>
    %81 = vector.broadcast %16 : vector<1x16xf32> to vector<8x16xf32>
    %82 = arith.addf %80, %81 : vector<8x16xf32>
    %cst_48 = arith.constant 0.000000e+00 : f32
    %83 = vector.broadcast %cst_48 : f32 to vector<8x16xf32>
    %84 = arith.maximumf %82, %83 : vector<8x16xf32>
    %cst_49 = arith.constant dense<0.000000e+00> : vector<8x16xf32>
    %85 = tpu.matmul %84, %18, %cst_49 {dimension_numbers = #tpu.dot_dimension_numbers<[1], [0], [0], [1], [0, 0, 1, 1], [], []>} : vector<8x16xf32>, vector<16x16xf32>, vector<8x16xf32> -> vector<8x16xf32>
    %86 = vector.broadcast %20 : vector<1x16xf32> to vector<8x16xf32>
    %87 = arith.addf %85, %86 : vector<8x16xf32>
    %88 = arith.addf %87, %79 : vector<8x16xf32>
    %cst_50 = arith.constant dense<0.000000e+00> : vector<8xf32>
    %89 = vector.multi_reduction <add>, %88, %cst_50 [1] : vector<8x16xf32> to vector<8xf32>
    %90 = vector.shape_cast %89 : vector<8xf32> to vector<8x1xf32>
    %cst_51 = arith.constant 1.600000e+01 : f32
    %91 = vector.broadcast %cst_51 : f32 to vector<8x1xf32>
    %92 = arith.divf %90, %91 : vector<8x1xf32>
    %93 = vector.broadcast %92 : vector<8x1xf32> to vector<8x16xf32>
    %94 = arith.subf %88, %93 : vector<8x16xf32>
    %95 = arith.mulf %94, %94 : vector<8x16xf32>
    %cst_52 = arith.constant dense<0.000000e+00> : vector<8xf32>
    %96 = vector.multi_reduction <add>, %95, %cst_52 [1] : vector<8x16xf32> to vector<8xf32>
    %97 = vector.shape_cast %96 : vector<8xf32> to vector<8x1xf32>
    %cst_53 = arith.constant 1.600000e+01 : f32
    %98 = vector.broadcast %cst_53 : f32 to vector<8x1xf32>
    %99 = arith.divf %97, %98 : vector<8x1xf32>
    %100 = vector.broadcast %92 : vector<8x1xf32> to vector<8x16xf32>
    %101 = arith.subf %88, %100 : vector<8x16xf32>
    %cst_54 = arith.constant 9.99999974E-6 : f32
    %102 = vector.broadcast %cst_54 : f32 to vector<8x1xf32>
    %103 = arith.addf %99, %102 : vector<8x1xf32>
    %104 = math.rsqrt %103 : vector<8x1xf32>
    %105 = vector.broadcast %104 : vector<8x1xf32> to vector<8x16xf32>
    %106 = arith.mulf %101, %105 : vector<8x16xf32>
    %107 = vector.broadcast %22 : vector<1x16xf32> to vector<8x16xf32>
    %108 = arith.mulf %106, %107 : vector<8x16xf32>
    %109 = vector.broadcast %24 : vector<1x16xf32> to vector<8x16xf32>
    %110 = arith.addf %108, %109 : vector<8x16xf32>
    %c1 = arith.constant 1 : index
    %c0_55 = arith.constant 0 : index
    %c0_56 = arith.constant 0 : index
    %c0_57 = arith.constant 0 : index
    %111 = vector.load %arg1[%c1, %c0_55, %c0_56, %c0_57] : memref<3x4x16x16xf32, #tpu.memory_space<vmem>>, vector<1x4x16x16xf32>
    %112 = vector.shape_cast %111 : vector<1x4x16x16xf32> to vector<4x16x16xf32>
    %c1_58 = arith.constant 1 : index
    %c0_59 = arith.constant 0 : index
    %c0_60 = arith.constant 0 : index
    %c0_61 = arith.constant 0 : index
    %113 = vector.load %arg2[%c1_58, %c0_59, %c0_60, %c0_61] : memref<3x4x1x16xf32, #tpu.memory_space<vmem>>, vector<1x4x1x16xf32>
    %114 = vector.shape_cast %113 : vector<1x4x1x16xf32> to vector<4x1x16xf32>
    %c1_62 = arith.constant 1 : index
    %c0_63 = arith.constant 0 : index
    %c0_64 = arith.constant 0 : index
    %c0_65 = arith.constant 0 : index
    %115 = vector.load %arg3[%c1_62, %c0_63, %c0_64, %c0_65] : memref<3x4x16x16xf32, #tpu.memory_space<vmem>>, vector<1x4x16x16xf32>
    %116 = vector.shape_cast %115 : vector<1x4x16x16xf32> to vector<4x16x16xf32>
    %c1_66 = arith.constant 1 : index
    %c0_67 = arith.constant 0 : index
    %c0_68 = arith.constant 0 : index
    %117 = vector.load %arg4[%c1_66, %c0_67, %c0_68] : memref<3x1x16xf32, #tpu.memory_space<vmem>>, vector<1x1x16xf32>
    %118 = vector.shape_cast %117 : vector<1x1x16xf32> to vector<1x16xf32>
    %c1_69 = arith.constant 1 : index
    %c0_70 = arith.constant 0 : index
    %c0_71 = arith.constant 0 : index
    %119 = vector.load %arg5[%c1_69, %c0_70, %c0_71] : memref<3x16x16xf32, #tpu.memory_space<vmem>>, vector<1x16x16xf32>
    %120 = vector.shape_cast %119 : vector<1x16x16xf32> to vector<16x16xf32>
    %c1_72 = arith.constant 1 : index
    %c0_73 = arith.constant 0 : index
    %c0_74 = arith.constant 0 : index
    %121 = vector.load %arg6[%c1_72, %c0_73, %c0_74] : memref<3x1x16xf32, #tpu.memory_space<vmem>>, vector<1x1x16xf32>
    %122 = vector.shape_cast %121 : vector<1x1x16xf32> to vector<1x16xf32>
    %c1_75 = arith.constant 1 : index
    %c0_76 = arith.constant 0 : index
    %c0_77 = arith.constant 0 : index
    %123 = vector.load %arg7[%c1_75, %c0_76, %c0_77] : memref<3x16x16xf32, #tpu.memory_space<vmem>>, vector<1x16x16xf32>
    %124 = vector.shape_cast %123 : vector<1x16x16xf32> to vector<16x16xf32>
    %c1_78 = arith.constant 1 : index
    %c0_79 = arith.constant 0 : index
    %c0_80 = arith.constant 0 : index
    %125 = vector.load %arg8[%c1_78, %c0_79, %c0_80] : memref<3x1x16xf32, #tpu.memory_space<vmem>>, vector<1x1x16xf32>
    %126 = vector.shape_cast %125 : vector<1x1x16xf32> to vector<1x16xf32>
    %c1_81 = arith.constant 1 : index
    %c0_82 = arith.constant 0 : index
    %c0_83 = arith.constant 0 : index
    %127 = vector.load %arg9[%c1_81, %c0_82, %c0_83] : memref<3x1x16xf32, #tpu.memory_space<vmem>>, vector<1x1x16xf32>
    %128 = vector.shape_cast %127 : vector<1x1x16xf32> to vector<1x16xf32>
    %c1_84 = arith.constant 1 : index
    %c0_85 = arith.constant 0 : index
    %c0_86 = arith.constant 0 : index
    %129 = vector.load %arg10[%c1_84, %c0_85, %c0_86] : memref<3x1x16xf32, #tpu.memory_space<vmem>>, vector<1x1x16xf32>
    %130 = vector.shape_cast %129 : vector<1x1x16xf32> to vector<1x16xf32>
    %131 = vector.shape_cast %110 : vector<8x16xf32> to vector<1x8x16xf32>
    %132 = vector.shape_cast %131 : vector<1x8x16xf32> to vector<1x8x16xf32>
    %133 = vector.broadcast %132 : vector<1x8x16xf32> to vector<4x8x16xf32>
    "tpu.trace_start"() <{level = 10 : i32, message = "hnd,hde->hne"}> : () -> ()
    %cst_87 = arith.constant dense<0.000000e+00> : vector<4x8x16xf32>
    %134 = tpu.matmul %133, %112, %cst_87 {dimension_numbers = #tpu.dot_dimension_numbers<[2], [1], [1], [2], [0, 0, 0, 1, 1, 2], [0], [0]>} : vector<4x8x16xf32>, vector<4x16x16xf32>, vector<4x8x16xf32> -> vector<4x8x16xf32>
    "tpu.trace_stop"() : () -> ()
    %135 = vector.broadcast %114 : vector<4x1x16xf32> to vector<4x8x16xf32>
    %136 = arith.addf %134, %135 : vector<4x8x16xf32>
    "tpu.trace_start"() <{level = 10 : i32, message = "hnd,hmd->hnm"}> : () -> ()
    %cst_88 = arith.constant dense<0.000000e+00> : vector<4x8x8xf32>
    %137 = tpu.matmul %136, %136, %cst_88 {dimension_numbers = #tpu.dot_dimension_numbers<[2], [2], [1], [1], [0, 0, 0, 1, 1, 1], [0], [0]>} : vector<4x8x16xf32>, vector<4x8x16xf32>, vector<4x8x8xf32> -> vector<4x8x8xf32>
    "tpu.trace_stop"() : () -> ()
    %cst_89 = arith.constant 2.500000e-01 : f32
    %138 = vector.broadcast %cst_89 : f32 to vector<4x8x8xf32>
    %139 = arith.mulf %137, %138 : vector<4x8x8xf32>
    %cst_90 = arith.constant -1.000000e+30 : f32
    %140 = vector.shape_cast %4 : vector<1x8x8xi1> to vector<1x8x8xi1>
    %141 = vector.broadcast %140 : vector<1x8x8xi1> to vector<4x8x8xi1>
    %142 = vector.broadcast %cst_90 : f32 to vector<4x8x8xf32>
    %143 = arith.select %141, %139, %142 : vector<4x8x8xi1>, vector<4x8x8xf32>
    %cst_91 = arith.constant dense<0xFF800000> : vector<4x8xf32>
    %144 = vector.multi_reduction <maximumf>, %143, %cst_91 [2] : vector<4x8x8xf32> to vector<4x8xf32>
    %145 = vector.shape_cast %144 : vector<4x8xf32> to vector<4x8x1xf32>
    %146 = vector.broadcast %145 : vector<4x8x1xf32> to vector<4x8x8xf32>
    %147 = arith.subf %143, %146 : vector<4x8x8xf32>
    %148 = math.exp %147 : vector<4x8x8xf32>
    %cst_92 = arith.constant dense<0.000000e+00> : vector<4x8xf32>
    %149 = vector.multi_reduction <add>, %148, %cst_92 [2] : vector<4x8x8xf32> to vector<4x8xf32>
    %150 = vector.shape_cast %149 : vector<4x8xf32> to vector<4x8x1xf32>
    %151 = tpu.reciprocal %150 {approx = true} : vector<4x8x1xf32> -> vector<4x8x1xf32>
    %152 = vector.broadcast %151 : vector<4x8x1xf32> to vector<4x8x8xf32>
    %153 = arith.mulf %148, %152 : vector<4x8x8xf32>
    "tpu.trace_start"() <{level = 10 : i32, message = "hnm,hmd->hnd"}> : () -> ()
    %cst_93 = arith.constant dense<0.000000e+00> : vector<4x8x16xf32>
    %154 = tpu.matmul %153, %136, %cst_93 {dimension_numbers = #tpu.dot_dimension_numbers<[2], [1], [1], [2], [0, 0, 0, 1, 1, 2], [0], [0]>} : vector<4x8x8xf32>, vector<4x8x16xf32>, vector<4x8x16xf32> -> vector<4x8x16xf32>
    "tpu.trace_stop"() : () -> ()
    %155 = vector.shape_cast %110 : vector<8x16xf32> to vector<1x8x16xf32>
    %156 = vector.broadcast %155 : vector<1x8x16xf32> to vector<4x8x16xf32>
    %157 = arith.addf %154, %156 : vector<4x8x16xf32>
    %cst_94 = arith.constant dense<0.000000e+00> : vector<4x8xf32>
    %158 = vector.multi_reduction <add>, %157, %cst_94 [2] : vector<4x8x16xf32> to vector<4x8xf32>
    %159 = vector.shape_cast %158 : vector<4x8xf32> to vector<4x8x1xf32>
    %cst_95 = arith.constant 1.600000e+01 : f32
    %160 = vector.broadcast %cst_95 : f32 to vector<4x8x1xf32>
    %161 = arith.divf %159, %160 : vector<4x8x1xf32>
    %162 = vector.broadcast %161 : vector<4x8x1xf32> to vector<4x8x16xf32>
    %163 = arith.subf %157, %162 : vector<4x8x16xf32>
    %164 = arith.mulf %163, %163 : vector<4x8x16xf32>
    %cst_96 = arith.constant dense<0.000000e+00> : vector<4x8xf32>
    %165 = vector.multi_reduction <add>, %164, %cst_96 [2] : vector<4x8x16xf32> to vector<4x8xf32>
    %166 = vector.shape_cast %165 : vector<4x8xf32> to vector<4x8x1xf32>
    %cst_97 = arith.constant 1.600000e+01 : f32
    %167 = vector.broadcast %cst_97 : f32 to vector<4x8x1xf32>
    %168 = arith.divf %166, %167 : vector<4x8x1xf32>
    %169 = vector.broadcast %161 : vector<4x8x1xf32> to vector<4x8x16xf32>
    %170 = arith.subf %157, %169 : vector<4x8x16xf32>
    %cst_98 = arith.constant 9.99999974E-6 : f32
    %171 = vector.broadcast %cst_98 : f32 to vector<4x8x1xf32>
    %172 = arith.addf %168, %171 : vector<4x8x1xf32>
    %173 = math.rsqrt %172 : vector<4x8x1xf32>
    %174 = vector.broadcast %173 : vector<4x8x1xf32> to vector<4x8x16xf32>
    %175 = arith.mulf %170, %174 : vector<4x8x16xf32>
    %176 = vector.shape_cast %128 : vector<1x16xf32> to vector<1x1x16xf32>
    %177 = vector.broadcast %176 : vector<1x1x16xf32> to vector<4x8x16xf32>
    %178 = arith.mulf %175, %177 : vector<4x8x16xf32>
    %179 = vector.shape_cast %130 : vector<1x16xf32> to vector<1x1x16xf32>
    %180 = vector.broadcast %179 : vector<1x1x16xf32> to vector<4x8x16xf32>
    %181 = arith.addf %178, %180 : vector<4x8x16xf32>
    "tpu.trace_start"() <{level = 10 : i32, message = "hnd,hde->hne"}> : () -> ()
    %cst_99 = arith.constant dense<0.000000e+00> : vector<4x8x16xf32>
    %182 = tpu.matmul %181, %116, %cst_99 {dimension_numbers = #tpu.dot_dimension_numbers<[2], [1], [1], [2], [0, 0, 0, 1, 1, 2], [0], [0]>} : vector<4x8x16xf32>, vector<4x16x16xf32>, vector<4x8x16xf32> -> vector<4x8x16xf32>
    "tpu.trace_stop"() : () -> ()
    %cst_100 = arith.constant dense<0.000000e+00> : vector<8x16xf32>
    %183 = vector.multi_reduction <add>, %182, %cst_100 [0] : vector<4x8x16xf32> to vector<8x16xf32>
    %184 = vector.broadcast %118 : vector<1x16xf32> to vector<8x16xf32>
    %185 = arith.addf %183, %184 : vector<8x16xf32>
    %cst_101 = arith.constant dense<0.000000e+00> : vector<8x16xf32>
    %186 = tpu.matmul %185, %120, %cst_101 {dimension_numbers = #tpu.dot_dimension_numbers<[1], [0], [0], [1], [0, 0, 1, 1], [], []>} : vector<8x16xf32>, vector<16x16xf32>, vector<8x16xf32> -> vector<8x16xf32>
    %187 = vector.broadcast %122 : vector<1x16xf32> to vector<8x16xf32>
    %188 = arith.addf %186, %187 : vector<8x16xf32>
    %cst_102 = arith.constant 0.000000e+00 : f32
    %189 = vector.broadcast %cst_102 : f32 to vector<8x16xf32>
    %190 = arith.maximumf %188, %189 : vector<8x16xf32>
    %cst_103 = arith.constant dense<0.000000e+00> : vector<8x16xf32>
    %191 = tpu.matmul %190, %124, %cst_103 {dimension_numbers = #tpu.dot_dimension_numbers<[1], [0], [0], [1], [0, 0, 1, 1], [], []>} : vector<8x16xf32>, vector<16x16xf32>, vector<8x16xf32> -> vector<8x16xf32>
    %192 = vector.broadcast %126 : vector<1x16xf32> to vector<8x16xf32>
    %193 = arith.addf %191, %192 : vector<8x16xf32>
    %194 = arith.addf %193, %185 : vector<8x16xf32>
    %cst_104 = arith.constant dense<0.000000e+00> : vector<8xf32>
    %195 = vector.multi_reduction <add>, %194, %cst_104 [1] : vector<8x16xf32> to vector<8xf32>
    %196 = vector.shape_cast %195 : vector<8xf32> to vector<8x1xf32>
    %cst_105 = arith.constant 1.600000e+01 : f32
    %197 = vector.broadcast %cst_105 : f32 to vector<8x1xf32>
    %198 = arith.divf %196, %197 : vector<8x1xf32>
    %199 = vector.broadcast %198 : vector<8x1xf32> to vector<8x16xf32>
    %200 = arith.subf %194, %199 : vector<8x16xf32>
    %201 = arith.mulf %200, %200 : vector<8x16xf32>
    %cst_106 = arith.constant dense<0.000000e+00> : vector<8xf32>
    %202 = vector.multi_reduction <add>, %201, %cst_106 [1] : vector<8x16xf32> to vector<8xf32>
    %203 = vector.shape_cast %202 : vector<8xf32> to vector<8x1xf32>
    %cst_107 = arith.constant 1.600000e+01 : f32
    %204 = vector.broadcast %cst_107 : f32 to vector<8x1xf32>
    %205 = arith.divf %203, %204 : vector<8x1xf32>
    %206 = vector.broadcast %198 : vector<8x1xf32> to vector<8x16xf32>
    %207 = arith.subf %194, %206 : vector<8x16xf32>
    %cst_108 = arith.constant 9.99999974E-6 : f32
    %208 = vector.broadcast %cst_108 : f32 to vector<8x1xf32>
    %209 = arith.addf %205, %208 : vector<8x1xf32>
    %210 = math.rsqrt %209 : vector<8x1xf32>
    %211 = vector.broadcast %210 : vector<8x1xf32> to vector<8x16xf32>
    %212 = arith.mulf %207, %211 : vector<8x16xf32>
    %213 = vector.broadcast %128 : vector<1x16xf32> to vector<8x16xf32>
    %214 = arith.mulf %212, %213 : vector<8x16xf32>
    %215 = vector.broadcast %130 : vector<1x16xf32> to vector<8x16xf32>
    %216 = arith.addf %214, %215 : vector<8x16xf32>
    %c2 = arith.constant 2 : index
    %c0_109 = arith.constant 0 : index
    %c0_110 = arith.constant 0 : index
    %c0_111 = arith.constant 0 : index
    %217 = vector.load %arg1[%c2, %c0_109, %c0_110, %c0_111] : memref<3x4x16x16xf32, #tpu.memory_space<vmem>>, vector<1x4x16x16xf32>
    %218 = vector.shape_cast %217 : vector<1x4x16x16xf32> to vector<4x16x16xf32>
    %c2_112 = arith.constant 2 : index
    %c0_113 = arith.constant 0 : index
    %c0_114 = arith.constant 0 : index
    %c0_115 = arith.constant 0 : index
    %219 = vector.load %arg2[%c2_112, %c0_113, %c0_114, %c0_115] : memref<3x4x1x16xf32, #tpu.memory_space<vmem>>, vector<1x4x1x16xf32>
    %220 = vector.shape_cast %219 : vector<1x4x1x16xf32> to vector<4x1x16xf32>
    %c2_116 = arith.constant 2 : index
    %c0_117 = arith.constant 0 : index
    %c0_118 = arith.constant 0 : index
    %c0_119 = arith.constant 0 : index
    %221 = vector.load %arg3[%c2_116, %c0_117, %c0_118, %c0_119] : memref<3x4x16x16xf32, #tpu.memory_space<vmem>>, vector<1x4x16x16xf32>
    %222 = vector.shape_cast %221 : vector<1x4x16x16xf32> to vector<4x16x16xf32>
    %c2_120 = arith.constant 2 : index
    %c0_121 = arith.constant 0 : index
    %c0_122 = arith.constant 0 : index
    %223 = vector.load %arg4[%c2_120, %c0_121, %c0_122] : memref<3x1x16xf32, #tpu.memory_space<vmem>>, vector<1x1x16xf32>
    %224 = vector.shape_cast %223 : vector<1x1x16xf32> to vector<1x16xf32>
    %c2_123 = arith.constant 2 : index
    %c0_124 = arith.constant 0 : index
    %c0_125 = arith.constant 0 : index
    %225 = vector.load %arg5[%c2_123, %c0_124, %c0_125] : memref<3x16x16xf32, #tpu.memory_space<vmem>>, vector<1x16x16xf32>
    %226 = vector.shape_cast %225 : vector<1x16x16xf32> to vector<16x16xf32>
    %c2_126 = arith.constant 2 : index
    %c0_127 = arith.constant 0 : index
    %c0_128 = arith.constant 0 : index
    %227 = vector.load %arg6[%c2_126, %c0_127, %c0_128] : memref<3x1x16xf32, #tpu.memory_space<vmem>>, vector<1x1x16xf32>
    %228 = vector.shape_cast %227 : vector<1x1x16xf32> to vector<1x16xf32>
    %c2_129 = arith.constant 2 : index
    %c0_130 = arith.constant 0 : index
    %c0_131 = arith.constant 0 : index
    %229 = vector.load %arg7[%c2_129, %c0_130, %c0_131] : memref<3x16x16xf32, #tpu.memory_space<vmem>>, vector<1x16x16xf32>
    %230 = vector.shape_cast %229 : vector<1x16x16xf32> to vector<16x16xf32>
    %c2_132 = arith.constant 2 : index
    %c0_133 = arith.constant 0 : index
    %c0_134 = arith.constant 0 : index
    %231 = vector.load %arg8[%c2_132, %c0_133, %c0_134] : memref<3x1x16xf32, #tpu.memory_space<vmem>>, vector<1x1x16xf32>
    %232 = vector.shape_cast %231 : vector<1x1x16xf32> to vector<1x16xf32>
    %c2_135 = arith.constant 2 : index
    %c0_136 = arith.constant 0 : index
    %c0_137 = arith.constant 0 : index
    %233 = vector.load %arg9[%c2_135, %c0_136, %c0_137] : memref<3x1x16xf32, #tpu.memory_space<vmem>>, vector<1x1x16xf32>
    %234 = vector.shape_cast %233 : vector<1x1x16xf32> to vector<1x16xf32>
    %c2_138 = arith.constant 2 : index
    %c0_139 = arith.constant 0 : index
    %c0_140 = arith.constant 0 : index
    %235 = vector.load %arg10[%c2_138, %c0_139, %c0_140] : memref<3x1x16xf32, #tpu.memory_space<vmem>>, vector<1x1x16xf32>
    %236 = vector.shape_cast %235 : vector<1x1x16xf32> to vector<1x16xf32>
    %237 = vector.shape_cast %216 : vector<8x16xf32> to vector<1x8x16xf32>
    %238 = vector.shape_cast %237 : vector<1x8x16xf32> to vector<1x8x16xf32>
    %239 = vector.broadcast %238 : vector<1x8x16xf32> to vector<4x8x16xf32>
    "tpu.trace_start"() <{level = 10 : i32, message = "hnd,hde->hne"}> : () -> ()
    %cst_141 = arith.constant dense<0.000000e+00> : vector<4x8x16xf32>
    %240 = tpu.matmul %239, %218, %cst_141 {dimension_numbers = #tpu.dot_dimension_numbers<[2], [1], [1], [2], [0, 0, 0, 1, 1, 2], [0], [0]>} : vector<4x8x16xf32>, vector<4x16x16xf32>, vector<4x8x16xf32> -> vector<4x8x16xf32>
    "tpu.trace_stop"() : () -> ()
    %241 = vector.broadcast %220 : vector<4x1x16xf32> to vector<4x8x16xf32>
    %242 = arith.addf %240, %241 : vector<4x8x16xf32>
    "tpu.trace_start"() <{level = 10 : i32, message = "hnd,hmd->hnm"}> : () -> ()
    %cst_142 = arith.constant dense<0.000000e+00> : vector<4x8x8xf32>
    %243 = tpu.matmul %242, %242, %cst_142 {dimension_numbers = #tpu.dot_dimension_numbers<[2], [2], [1], [1], [0, 0, 0, 1, 1, 1], [0], [0]>} : vector<4x8x16xf32>, vector<4x8x16xf32>, vector<4x8x8xf32> -> vector<4x8x8xf32>
    "tpu.trace_stop"() : () -> ()
    %cst_143 = arith.constant 2.500000e-01 : f32
    %244 = vector.broadcast %cst_143 : f32 to vector<4x8x8xf32>
    %245 = arith.mulf %243, %244 : vector<4x8x8xf32>
    %cst_144 = arith.constant -1.000000e+30 : f32
    %246 = vector.shape_cast %4 : vector<1x8x8xi1> to vector<1x8x8xi1>
    %247 = vector.broadcast %246 : vector<1x8x8xi1> to vector<4x8x8xi1>
    %248 = vector.broadcast %cst_144 : f32 to vector<4x8x8xf32>
    %249 = arith.select %247, %245, %248 : vector<4x8x8xi1>, vector<4x8x8xf32>
    %cst_145 = arith.constant dense<0xFF800000> : vector<4x8xf32>
    %250 = vector.multi_reduction <maximumf>, %249, %cst_145 [2] : vector<4x8x8xf32> to vector<4x8xf32>
    %251 = vector.shape_cast %250 : vector<4x8xf32> to vector<4x8x1xf32>
    %252 = vector.broadcast %251 : vector<4x8x1xf32> to vector<4x8x8xf32>
    %253 = arith.subf %249, %252 : vector<4x8x8xf32>
    %254 = math.exp %253 : vector<4x8x8xf32>
    %cst_146 = arith.constant dense<0.000000e+00> : vector<4x8xf32>
    %255 = vector.multi_reduction <add>, %254, %cst_146 [2] : vector<4x8x8xf32> to vector<4x8xf32>
    %256 = vector.shape_cast %255 : vector<4x8xf32> to vector<4x8x1xf32>
    %257 = tpu.reciprocal %256 {approx = true} : vector<4x8x1xf32> -> vector<4x8x1xf32>
    %258 = vector.broadcast %257 : vector<4x8x1xf32> to vector<4x8x8xf32>
    %259 = arith.mulf %254, %258 : vector<4x8x8xf32>
    "tpu.trace_start"() <{level = 10 : i32, message = "hnm,hmd->hnd"}> : () -> ()
    %cst_147 = arith.constant dense<0.000000e+00> : vector<4x8x16xf32>
    %260 = tpu.matmul %259, %242, %cst_147 {dimension_numbers = #tpu.dot_dimension_numbers<[2], [1], [1], [2], [0, 0, 0, 1, 1, 2], [0], [0]>} : vector<4x8x8xf32>, vector<4x8x16xf32>, vector<4x8x16xf32> -> vector<4x8x16xf32>
    "tpu.trace_stop"() : () -> ()
    %261 = vector.shape_cast %216 : vector<8x16xf32> to vector<1x8x16xf32>
    %262 = vector.broadcast %261 : vector<1x8x16xf32> to vector<4x8x16xf32>
    %263 = arith.addf %260, %262 : vector<4x8x16xf32>
    %cst_148 = arith.constant dense<0.000000e+00> : vector<4x8xf32>
    %264 = vector.multi_reduction <add>, %263, %cst_148 [2] : vector<4x8x16xf32> to vector<4x8xf32>
    %265 = vector.shape_cast %264 : vector<4x8xf32> to vector<4x8x1xf32>
    %cst_149 = arith.constant 1.600000e+01 : f32
    %266 = vector.broadcast %cst_149 : f32 to vector<4x8x1xf32>
    %267 = arith.divf %265, %266 : vector<4x8x1xf32>
    %268 = vector.broadcast %267 : vector<4x8x1xf32> to vector<4x8x16xf32>
    %269 = arith.subf %263, %268 : vector<4x8x16xf32>
    %270 = arith.mulf %269, %269 : vector<4x8x16xf32>
    %cst_150 = arith.constant dense<0.000000e+00> : vector<4x8xf32>
    %271 = vector.multi_reduction <add>, %270, %cst_150 [2] : vector<4x8x16xf32> to vector<4x8xf32>
    %272 = vector.shape_cast %271 : vector<4x8xf32> to vector<4x8x1xf32>
    %cst_151 = arith.constant 1.600000e+01 : f32
    %273 = vector.broadcast %cst_151 : f32 to vector<4x8x1xf32>
    %274 = arith.divf %272, %273 : vector<4x8x1xf32>
    %275 = vector.broadcast %267 : vector<4x8x1xf32> to vector<4x8x16xf32>
    %276 = arith.subf %263, %275 : vector<4x8x16xf32>
    %cst_152 = arith.constant 9.99999974E-6 : f32
    %277 = vector.broadcast %cst_152 : f32 to vector<4x8x1xf32>
    %278 = arith.addf %274, %277 : vector<4x8x1xf32>
    %279 = math.rsqrt %278 : vector<4x8x1xf32>
    %280 = vector.broadcast %279 : vector<4x8x1xf32> to vector<4x8x16xf32>
    %281 = arith.mulf %276, %280 : vector<4x8x16xf32>
    %282 = vector.shape_cast %234 : vector<1x16xf32> to vector<1x1x16xf32>
    %283 = vector.broadcast %282 : vector<1x1x16xf32> to vector<4x8x16xf32>
    %284 = arith.mulf %281, %283 : vector<4x8x16xf32>
    %285 = vector.shape_cast %236 : vector<1x16xf32> to vector<1x1x16xf32>
    %286 = vector.broadcast %285 : vector<1x1x16xf32> to vector<4x8x16xf32>
    %287 = arith.addf %284, %286 : vector<4x8x16xf32>
    "tpu.trace_start"() <{level = 10 : i32, message = "hnd,hde->hne"}> : () -> ()
    %cst_153 = arith.constant dense<0.000000e+00> : vector<4x8x16xf32>
    %288 = tpu.matmul %287, %222, %cst_153 {dimension_numbers = #tpu.dot_dimension_numbers<[2], [1], [1], [2], [0, 0, 0, 1, 1, 2], [0], [0]>} : vector<4x8x16xf32>, vector<4x16x16xf32>, vector<4x8x16xf32> -> vector<4x8x16xf32>
    "tpu.trace_stop"() : () -> ()
    %cst_154 = arith.constant dense<0.000000e+00> : vector<8x16xf32>
    %289 = vector.multi_reduction <add>, %288, %cst_154 [0] : vector<4x8x16xf32> to vector<8x16xf32>
    %290 = vector.broadcast %224 : vector<1x16xf32> to vector<8x16xf32>
    %291 = arith.addf %289, %290 : vector<8x16xf32>
    %cst_155 = arith.constant dense<0.000000e+00> : vector<8x16xf32>
    %292 = tpu.matmul %291, %226, %cst_155 {dimension_numbers = #tpu.dot_dimension_numbers<[1], [0], [0], [1], [0, 0, 1, 1], [], []>} : vector<8x16xf32>, vector<16x16xf32>, vector<8x16xf32> -> vector<8x16xf32>
    %293 = vector.broadcast %228 : vector<1x16xf32> to vector<8x16xf32>
    %294 = arith.addf %292, %293 : vector<8x16xf32>
    %cst_156 = arith.constant 0.000000e+00 : f32
    %295 = vector.broadcast %cst_156 : f32 to vector<8x16xf32>
    %296 = arith.maximumf %294, %295 : vector<8x16xf32>
    %cst_157 = arith.constant dense<0.000000e+00> : vector<8x16xf32>
    %297 = tpu.matmul %296, %230, %cst_157 {dimension_numbers = #tpu.dot_dimension_numbers<[1], [0], [0], [1], [0, 0, 1, 1], [], []>} : vector<8x16xf32>, vector<16x16xf32>, vector<8x16xf32> -> vector<8x16xf32>
    %298 = vector.broadcast %232 : vector<1x16xf32> to vector<8x16xf32>
    %299 = arith.addf %297, %298 : vector<8x16xf32>
    %300 = arith.addf %299, %291 : vector<8x16xf32>
    %cst_158 = arith.constant dense<0.000000e+00> : vector<8xf32>
    %301 = vector.multi_reduction <add>, %300, %cst_158 [1] : vector<8x16xf32> to vector<8xf32>
    %302 = vector.shape_cast %301 : vector<8xf32> to vector<8x1xf32>
    %cst_159 = arith.constant 1.600000e+01 : f32
    %303 = vector.broadcast %cst_159 : f32 to vector<8x1xf32>
    %304 = arith.divf %302, %303 : vector<8x1xf32>
    %305 = vector.broadcast %304 : vector<8x1xf32> to vector<8x16xf32>
    %306 = arith.subf %300, %305 : vector<8x16xf32>
    %307 = arith.mulf %306, %306 : vector<8x16xf32>
    %cst_160 = arith.constant dense<0.000000e+00> : vector<8xf32>
    %308 = vector.multi_reduction <add>, %307, %cst_160 [1] : vector<8x16xf32> to vector<8xf32>
    %309 = vector.shape_cast %308 : vector<8xf32> to vector<8x1xf32>
    %cst_161 = arith.constant 1.600000e+01 : f32
    %310 = vector.broadcast %cst_161 : f32 to vector<8x1xf32>
    %311 = arith.divf %309, %310 : vector<8x1xf32>
    %312 = vector.broadcast %304 : vector<8x1xf32> to vector<8x16xf32>
    %313 = arith.subf %300, %312 : vector<8x16xf32>
    %cst_162 = arith.constant 9.99999974E-6 : f32
    %314 = vector.broadcast %cst_162 : f32 to vector<8x1xf32>
    %315 = arith.addf %311, %314 : vector<8x1xf32>
    %316 = math.rsqrt %315 : vector<8x1xf32>
    %317 = vector.broadcast %316 : vector<8x1xf32> to vector<8x16xf32>
    %318 = arith.mulf %313, %317 : vector<8x16xf32>
    %319 = vector.broadcast %234 : vector<1x16xf32> to vector<8x16xf32>
    %320 = arith.mulf %318, %319 : vector<8x16xf32>
    %321 = vector.broadcast %236 : vector<1x16xf32> to vector<8x16xf32>
    %322 = arith.addf %320, %321 : vector<8x16xf32>
    %c0_163 = arith.constant 0 : index
    %c0_164 = arith.constant 0 : index
    %323 = vector.load %arg11[%c0_163, %c0_164] : memref<8x16xf32, #tpu.memory_space<vmem>>, vector<8x16xf32>
    tpu.vector_store %arg11[%c0_163, %c0_164], %322 {strides = array<i32>} : memref<8x16xf32, #tpu.memory_space<vmem>>, vector<8x16xf32>,
    return
  }
}

</mosaic_0001>

<bundles_post_ra>
// kernel: transformer_network.1
= control target key start
LH: loop header
LB: loop body
LE: loop exit
PB: predicated region body
PF: predicated region fallthrough
CT: control target
= control target key end

     0   :  { %16 = vsyncpa [#allocation3], 0  ;;  %s6334_s0 = inlined_call_operand.hbm [shape: f32[8,16], index: 0, kind: input, shape index: {}]   ;;  %s6335_s1 = inlined_call_operand.hbm [shape: f32[3,4,16,16], index: 1, kind: input, shape index: {}]   ;;  %s6336_s2 = inlined_call_operand.vmem [shape: f32[3,4,1,16], index: 2, kind: input, shape index: {}]   ;;  %s6337_s3 = inlined_call_operand.hbm [shape: f32[3,4,16,16], index: 3, kind: input, shape index: {}]   ;;  %s6338_s4 = inlined_call_operand.vmem [shape: f32[3,1,16], index: 4, kind: input, shape index: {}]   ;;  %s6339_s5 = inlined_call_operand.hbm [shape: f32[3,16,16], index: 5, kind: input, shape index: {}]   ;;  %s6340_s6 = inlined_call_operand.vmem [shape: f32[3,1,16], index: 6, kind: input, shape index: {}]   ;;  %s6341_s7 = inlined_call_operand.hbm [shape: f32[3,16,16], index: 7, kind: input, shape index: {}]   ;;  %s6342_s8 = inlined_call_operand.hbm [shape: f32[3,1,16], index: 8, kind: input, shape index: {}]   ;;  %s6343_s9 = inlined_call_operand.vmem [shape: f32[3,1,16], index: 9, kind: input, shape index: {}]   ;;  %s6344_s10 = inlined_call_operand.vmem [shape: f32[3,1,16], index: 10, kind: input, shape index: {}]   ;;  %s6345_s11 = inlined_call_operand.hbm [shape: f32[8,16], index: 11, kind: output, shape index: {}]  }
   0x1   :  { %17 = vsyncpa [#allocation6], 0 }
   0x2   :  { %18 = vsyncpa [#allocation9], 0 }
   0x3   :  { %19 = vsyncpa [#allocation12], 0 }
   0x4   :  { %20 = vsyncpa [#allocation4], 0  ;;  %s5667_s17 = smov [#allocation5]   ;;  %s5503_s21 = scalar_lea.hbm %s6335_s1, 3072 }
   0x5   :  { %s36_s18 = sshll.u32 %s5667_s17, 4  ;;  %p5504_p0 = scmp.ne.s32.totalorder %s6335_s1, %s5503_s21  ;;  %s37_s18 = int_to_ptr.vmem [resolvable:$true] %s36_s18 }
   0x6   :  { %p5507_p1 = scmp.lt.u32.totalorder %s5503_s21, %s6335_s1 }
   0x8   :  { %p5509_p2 = pnand %p5507_p1, %p5504_p0 }
   0xa   :  { %5512 = shalt.err (!%p5509_p2)
}
   0xb   :  { %s5513_s26 = scalar_lea.vmem %s37_s18, 3072  ;;  %p5518_p4 = scmp.lt.s32.totalorder %s37_s18, %s37_s18 }
   0xc   :  { %p5514_p3 = scmp.ne.s32.totalorder %s37_s18, %s5513_s26  ;;  %p5519_p5 = scmp.lt.s32.totalorder %s5513_s26, %s5513_s26 }
   0xe   :  { %p5520_p6 = por %p5519_p5, %p5518_p4 }
  0x10   :  { %p5521_p7 = pnand %p5520_p6, %p5514_p3 }
  0x12   :  { %5524 = shalt.err (!%p5521_p7)
}
  0x13   :  { %s5668_s27 = smov 128   ;;  %s5669_s28 = smov 8  }
  0x14   :  { %42 = dma.hbm_to_vmem [thread:$0]  %s6335_s1, 3072, %s37_s18, [#allocation6], %s5668_s27, %s5668_s27, %s5669_s28  }
  0x15   :  { %s5670_s12 = smov [#allocation8]   ;;  %s5671_s14 = smov [#allocation2]  }
  0x16   :  { %s64_s13 = sshll.u32 %s5670_s12, 4  ;;  %s27_s15 = sshll.u32 %s5671_s14, 4  ;;  %s65_s13 = int_to_ptr.vmem [resolvable:$true] %s64_s13  ;;  %s28_s15 = int_to_ptr.vmem [resolvable:$true] %s27_s15 }
  0x17   :  { %s5525_s19 = scalar_lea.hbm %s6339_s5, 768 }
  0x18   :  { %p5526_p8 = scmp.ne.s32.totalorder %s6339_s5, %s5525_s19  ;;  %p5529_p9 = scmp.lt.u32.totalorder %s5525_s19, %s6339_s5 }
  0x1a   :  { %p5531_p10 = pnand %p5529_p9, %p5526_p8 }
  0x1c   :  { %5534 = shalt.err (!%p5531_p10)
}
  0x1d   :  { %s5535_s1 = scalar_lea.vmem %s65_s13, 768  ;;  %p5540_p12 = scmp.lt.s32.totalorder %s65_s13, %s65_s13 }
  0x1e   :  { %p5536_p11 = scmp.ne.s32.totalorder %s65_s13, %s5535_s1  ;;  %p5541_p13 = scmp.lt.s32.totalorder %s5535_s1, %s5535_s1 }
  0x20   :  { %p5542_p0 = por %p5541_p13, %p5540_p12 }
  0x22   :  { %p5543_p1 = pnand %p5542_p0, %p5536_p11 }
  0x24   :  { %5546 = shalt.err (!%p5543_p1)
}
  0x25   :  { %70 = dma.hbm_to_vmem [thread:$0]  %s6339_s5, 768, %s65_s13, [#allocation9], %s5668_s27, %s5668_s27, %s5669_s28  }
  0x26   :  { %s5547_s29 = scalar_lea.hbm %s6334_s0, 128 }
  0x27   :  { %p5548_p2 = scmp.ne.s32.totalorder %s6334_s0, %s5547_s29  ;;  %p5551_p3 = scmp.lt.u32.totalorder %s5547_s29, %s6334_s0 }
  0x29   :  { %p5553_p4 = pnand %p5551_p3, %p5548_p2 }
  0x2b   :  { %5556 = shalt.err (!%p5553_p4)
}
  0x2c   :  { %s5557_s17 = scalar_lea.vmem %s28_s15, 128  ;;  %p5562_p6 = scmp.lt.s32.totalorder %s28_s15, %s28_s15 }
  0x2d   :  { %p5558_p5 = scmp.ne.s32.totalorder %s28_s15, %s5557_s17  ;;  %p5563_p7 = scmp.lt.s32.totalorder %s5557_s17, %s5557_s17 }
  0x2f   :  { %p5564_p8 = por %p5563_p7, %p5562_p6 }
  0x31   :  { %p5565_p9 = pnand %p5564_p8, %p5558_p5 }
  0x33   :  { %5568 = shalt.err (!%p5565_p9)
}
  0x34   :  { %30 = dma.hbm_to_vmem [thread:$0]  %s6334_s0, 128, %s28_s15, [#allocation3]  }
  0x35   :  { %s5672_s19 = smov [#allocation7]   ;;  %s5673_s21 = smov [#allocation10]  }
  0x36   :  { %s50_s20 = sshll.u32 %s5672_s19, 4  ;;  %s78_s22 = sshll.u32 %s5673_s21, 4  ;;  %s51_s20 = int_to_ptr.vmem [resolvable:$true] %s50_s20  ;;  %s79_s22 = int_to_ptr.vmem [resolvable:$true] %s78_s22 }
  0x37   :  { %s5569_s18 = scalar_lea.hbm %s6337_s3, 3072 }
  0x38   :  { %p5570_p10 = scmp.ne.s32.totalorder %s6337_s3, %s5569_s18  ;;  %p5573_p11 = scmp.lt.u32.totalorder %s5569_s18, %s6337_s3 }
  0x3a   :  { %p5575_p12 = pnand %p5573_p11, %p5570_p10 }
  0x3c   :  { %5578 = shalt.err (!%p5575_p12)
}
  0x3d   :  { %s5579_s0 = scalar_lea.vmem %s51_s20, 3072  ;;  %p5584_p0 = scmp.lt.s32.totalorder %s51_s20, %s51_s20 }
  0x3e   :  { %p5580_p13 = scmp.ne.s32.totalorder %s51_s20, %s5579_s0  ;;  %p5585_p1 = scmp.lt.s32.totalorder %s5579_s0, %s5579_s0 }
  0x40   :  { %p5586_p2 = por %p5585_p1, %p5584_p0 }
  0x42   :  { %p5587_p3 = pnand %p5586_p2, %p5580_p13 }
  0x44   :  { %5590 = shalt.err (!%p5587_p3)
}
  0x45   :  { %56 = dma.hbm_to_vmem [thread:$0]  %s6337_s3, 3072, %s51_s20, [#allocation6], %s5668_s27, %s5668_s27, %s5669_s28  }
  0x46   :  { %s5591_s16 = scalar_lea.hbm %s6341_s7, 768 }
  0x47   :  { %p5592_p4 = scmp.ne.s32.totalorder %s6341_s7, %s5591_s16  ;;  %p5595_p5 = scmp.lt.u32.totalorder %s5591_s16, %s6341_s7 }
  0x49   :  { %p5597_p6 = pnand %p5595_p5, %p5592_p4 }
  0x4b   :  { %5600 = shalt.err (!%p5597_p6)
}
  0x4c   :  { %s5601_s21 = scalar_lea.vmem %s79_s22, 768  ;;  %p5606_p8 = scmp.lt.s32.totalorder %s79_s22, %s79_s22 }
  0x4d   :  { %p5602_p7 = scmp.ne.s32.totalorder %s79_s22, %s5601_s21  ;;  %p5607_p9 = scmp.lt.s32.totalorder %s5601_s21, %s5601_s21 }
  0x4f   :  { %p5608_p10 = por %p5607_p9, %p5606_p8 }
  0x51   :  { %p5609_p11 = pnand %p5608_p10, %p5602_p7 }
  0x53   :  { %5612 = shalt.err (!%p5609_p11)
}
  0x54   :  { %84 = dma.hbm_to_vmem [thread:$0]  %s6341_s7, 768, %s79_s22, [#allocation9], %s5668_s27, %s5668_s27, %s5669_s28  }
  0x55   :  { %s5674_s23 = smov [#allocation11]   ;;  %s5613_s25 = scalar_lea.hbm %s6342_s8, 48 }
  0x56   :  { %s90_s1 = sshll.u32 %s5674_s23, 4  ;;  %p5614_p12 = scmp.ne.s32.totalorder %s6342_s8, %s5613_s25  ;;  %s91_s1 = int_to_ptr.vmem [resolvable:$true] %s90_s1 }
  0x57   :  { %p5617_p13 = scmp.lt.u32.totalorder %s5613_s25, %s6342_s8 }
  0x59   :  { %p5619_p0 = pnand %p5617_p13, %p5614_p12 }
  0x5b   :  { %5622 = shalt.err (!%p5619_p0)
}
  0x5c   :  { %s5623_s30 = scalar_lea.vmem %s91_s1, 48  ;;  %s5627_s7 = scalar_lea.vmem %s91_s1, 64 }
  0x5d   :  { %p5624_p1 = scmp.ne.s32.totalorder %s91_s1, %s5623_s30  ;;  %p5628_p2 = scmp.lt.s32.totalorder %s91_s1, %s91_s1 }
  0x5e   :  { %p5629_p3 = scmp.lt.s32.totalorder %s5627_s7, %s5623_s30 }
  0x60   :  { %p5630_p4 = por %p5629_p3, %p5628_p2 }
  0x62   :  { %p5631_p5 = pnand %p5630_p4, %p5624_p1 }
  0x64   :  { %5634 = shalt.err (!%p5631_p5)
}
  0x65   :  { %s5675_s27 = smov 16   ;;  %s5676_s28 = smov 1  }
  0x66   :  { %96 = dma.hbm_to_vmem [thread:$0]  %s6342_s8, 48, %s91_s1, [#allocation12], %s5675_s27, %s5675_s27, %s5676_s28  }
  0x67   :  { %5657 = dma.done.wait [#allocation3], 128  }
  0x68   :  { %5658 = vsyncadd [#allocation3], 4294967168 }
  0x69   :  { %5659 = dma.done.wait [#allocation6], 6144  }
  0x6a   :  { %5660 = vsyncadd [#allocation6], 4294961152 }
  0x6b   :  { %5661 = dma.done.wait [#allocation9], 1536  }
  0x6c   :  { %5662 = vsyncadd [#allocation9], 4294965760 }
  0x6d   :  { %5663 = dma.done.wait [#allocation12], 48  }
  0x6e   :  { %5664 = vsyncadd [#allocation12], 4294967248  ;;  %v5677_v0 = vmov 0.0|0.0   ;;  %vm5678_vm0 = vmmov 0   ;;  %v5679_v1 = vmov 0.0   ;;  %v125_v2 = vld [vmem:[#allocation5] sm:$0xff]  ;;  %v120_v31 = vlaneseq }
  0x6f   :  { %5321 = vmatprep.subr.bf16.mxu0 %v5677_v0  ;;  %5324 = vmatprep.subr.bf16.mxu1 %v5677_v0  ;;  %v126_v3 = vld [vmem:[#allocation5 + $0x8] sm:$0xff]  ;;  %v127_v4 = vld [vmem:[#allocation5 + $0x10] sm:$0xff]  ;;  %v128_v6 = vld [vmem:[#allocation5 + $0x18] sm:$0xff]  ;;  %vm178_vm1 = vcmask 130048   ;;  %vm764_vm3 = vcmask 64512  }
  0x70   :  { %4995 = vmatprep.mubr.msk.f32.mxu0 %vm5678_vm0, %v5679_v1  ;;  %5002 = vmatprep.mubr.msk.f32.mxu1 %vm5678_vm0, %v5679_v1  ;;  %v5322_v5 = vpack.c.bf16 %v126_v3, %v125_v2  ;;  %v129_v7 = vld [vmem:[#allocation5 + $0x20] sm:$0xff]  ;;  %v5325_v8 = vpack.c.bf16 %v128_v6, %v127_v4  ;;  %v130_v9 = vld [vmem:[#allocation5 + $0x28] sm:$0xff]  ;;  %v131_v10 = vld [vmem:[#allocation5 + $0x30] sm:$0xff]  ;;  %v121_v32 = vshrl.u32 %v120_v31, 7  ;;  %v123_v33 = vand.u32 127, %v120_v31 }
  0x71   :  { %v132_v11 = vld [vmem:[#allocation5 + $0x38] sm:$0xff]  ;;  %v5328_v13 = vpack.c.bf16 %v130_v9, %v129_v7  ;;  %v4744_v15 = vld [vmem:[%s6336_s2] ss:$0 sm:$0xff]  ;;  %v4745_v16 = vld [vmem:[%s6336_s2 + $0x1] ss:$0 sm:$0xff] }
  0x72   :  { %5323 = vmatpush3.bf16.msra.mxu0 %v5322_v5  ;;  %v5831_v12 = vld [vmem:[#allocation2] sm:$0xff]  ;;  %5326 = vmatpush3.bf16.msra.mxu1 %v5325_v8  ;;  %v5331_v14 = vpack.c.bf16 %v132_v11, %v131_v10  ;;  %v4746_v23 = vld [vmem:[%s6336_s2 + $0x2] ss:$0 sm:$0xff]  ;;  %v4747_v24 = vld [vmem:[%s6336_s2 + $0x3] ss:$0 sm:$0xff]  ;;  %vm5895_vm2 = vcmp.le.s32.totalorder %v123_v33, %v121_v32 }
  0x73   :  { %5327 = vmatprep.subr.bf16.mxu0 %v5677_v0  ;;  %5330 = vmatprep.subr.bf16.mxu1 %v5677_v0 }
  0x75   :  { %4996 = vmatmul.mubr.msk.f32.vlgmr.msra.gmra.mrb[0].mxu0 %vm178_vm1, %v5831_v12  ;;  %5003 = vmatmul.mubr.msk.f32.vlgmr.msra.gmra.mrb[0].mxu1 %vm178_vm1, %v5831_v12 }
  0x76   :  { %5329 = vmatpush3.bf16.msra.mxu0 %v5328_v13  ;;  %5332 = vmatpush3.bf16.msra.mxu1 %v5331_v14 }
  0x77   :  { %5009 = vmatprep.mubr.msk.f32.mxu0 %vm5678_vm0, %v5679_v1  ;;  %5016 = vmatprep.mubr.msk.f32.mxu1 %vm5678_vm0, %v5679_v1 }
  0x78   :  { %5019 = vmatprep.subr.mxu0 %v5679_v1  ;;  %5024 = vmatprep.subr.mxu1 %v5679_v1 }
  0x79   :  { %5010 = vmatmul.mubr.msk.f32.vlgmr.msra.gmra.mrb[2].mxu0 %vm178_vm1, %v5831_v12  ;;  %5017 = vmatmul.mubr.msk.f32.vlgmr.msra.gmra.mrb[2].mxu1 %vm178_vm1, %v5831_v12 }
  0x7a   :  { %5021 = vmatprep.mubr.msk.f32.mxu0 %vm5678_vm0, %v5679_v1  ;;  %5026 = vmatprep.mubr.msk.f32.mxu1 %vm5678_vm0, %v5679_v1 }
 0x148   :  { %v248_v17 = vpop.f32.mrb[0].mxu0  ;;  %v318_v19 = vpop.f32.mrb[0].mxu1 }
 0x149   :  { %v249_v18 = vadd.f32 %v4744_v15, %v248_v17  ;;  %v4997_v20 = vpop.f32.mrb[1].mxu0  ;;  %v319_v21 = vadd.f32 %v4745_v16, %v318_v19  ;;  %v5004_v22 = vpop.f32.mrb[1].mxu1 }
 0x14b   :  { %5020 = vmatpush3.xpose.msk.msra.mxu0 %vm178_vm1, %v249_v18  ;;  %5025 = vmatpush3.xpose.msk.msra.mxu1 %vm178_vm1, %v319_v21 }
 0x14c   :  { %v388_v25 = vpop.f32.mrb[2].mxu0  ;;  %5029 = vmatprep.subr.mxu0 %v5679_v1  ;;  %v458_v27 = vpop.f32.mrb[2].mxu1  ;;  %5034 = vmatprep.subr.mxu1 %v5679_v1 }
 0x14d   :  { %v5868_v26 = vadd.f32 %v4746_v23, %v388_v25  ;;  %v5011_v28 = vpop.f32.mrb[3].mxu0  ;;  %v5871_v29 = vadd.f32 %v4747_v24, %v458_v27  ;;  %v5018_v30 = vpop.f32.mrb[3].mxu1 }
 0x14e   :  { %5022 = vmatmul.mubr.msk.f32.vlgmr.msra.gmra.mrb[4].mxu0 %vm178_vm1, %v249_v18  ;;  %5027 = vmatmul.mubr.msk.f32.vlgmr.msra.gmra.mrb[4].mxu1 %vm178_vm1, %v319_v21 }
 0x14f   :  { %5030 = vmatpush3.xpose.msk.msra.mxu0 %vm178_vm1, %v5868_v26  ;;  %5035 = vmatpush3.xpose.msk.msra.mxu1 %vm178_vm1, %v5871_v29 }
 0x150   :  { %5031 = vmatprep.mubr.msk.f32.mxu0 %vm5678_vm0, %v5679_v1  ;;  %5036 = vmatprep.mubr.msk.f32.mxu1 %vm5678_vm0, %v5679_v1 }
 0x151   :  { %5039 = vmatprep.subr.mxu0 %v5679_v1  ;;  %5044 = vmatprep.subr.mxu1 %v5679_v1 }
 0x152   :  { %5032 = vmatmul.mubr.msk.f32.vlgmr.msra.gmra.mrb[6].mxu0 %vm178_vm1, %v5868_v26  ;;  %5037 = vmatmul.mubr.msk.f32.vlgmr.msra.gmra.mrb[6].mxu1 %vm178_vm1, %v5871_v29 }
 0x153   :  { %5040 = vmatpush3.msra.mxu0 %v249_v18  ;;  %5045 = vmatpush3.msra.mxu1 %v319_v21 }
 0x154   :  { %5041 = vmatprep.mubr.msk.f32.mxu0 %vm5678_vm0, %v5679_v1  ;;  %5049 = vmatprep.subr.mxu0 %v5679_v1 }
 0x155   :  { %5046 = vmatprep.mubr.msk.f32.mxu1 %vm5678_vm0, %v5679_v1  ;;  %5054 = vmatprep.subr.mxu1 %v5679_v1 }
 0x221   :  { %v531_v34 = vpop.f32.mrb[4].mxu0  ;;  %v604_v37 = vpop.f32.mrb[4].mxu1 }
 0x222   :  { %v754_v36 = vmul.f32 0.25, %v531_v34  ;;  %v5023_v38 = vpop.f32.mrb[5].mxu0  ;;  %v755_v39 = vmul.f32 0.25, %v604_v37  ;;  %v5028_v40 = vpop.f32.mrb[5].mxu1 }
 0x224   :  { %v760_v41 = vsel %vm5895_vm2, %v754_v36, -1e+30  ;;  %v761_v47 = vsel %vm5895_vm2, %v755_v39, -1e+30 }
 0x225   :  { %v677_v42 = vpop.f32.mrb[6].mxu0  ;;  %v765_v43 = vsel %vm764_vm3, %v760_v41, -inf  ;;  %v750_v45 = vpop.f32.mrb[6].mxu1  ;;  %v768_v51 = vsel %vm764_vm3, %v761_v47, -inf }
 0x226   :  { %v756_v44 = vmul.f32 0.25, %v677_v42  ;;  %766 = vmax.xlane.f32.xlu0 %v765_v43  ;;  %v5033_v46 = vpop.f32.mrb[7].mxu0  ;;  %v757_v48 = vmul.f32 0.25, %v750_v45  ;;  %v5038_v49 = vpop.f32.mrb[7].mxu1 }
 0x228   :  { %v762_v50 = vsel %vm5895_vm2, %v756_v44, -1e+30  ;;  %v763_v53 = vsel %vm5895_vm2, %v757_v48, -1e+30 }
 0x229   :  { %v771_v52 = vsel %vm764_vm3, %v762_v50, -inf  ;;  %v774_v54 = vsel %vm764_vm3, %v763_v53, -inf }
 0x22a   :  { %769 = vmax.xlane.f32.xlu0 %v768_v51  ;;  %772 = vmax.xlane.f32.xlu1 %v771_v52 }
 0x22e   :  { %775 = vmax.xlane.f32.xlu1 %v774_v54 }
 0x2b3   :  { %v767_v55 = vpop.xlane.xlu0 %766 }
 0x2b4   :  { %v777_v56 = vsub.f32 %v760_v41, %v767_v55 }
 0x2b6   :  { %v781_v57 = vmul.f32 1.442695, %v777_v56 }
 0x2b7   :  { %v770_v58 = vpop.xlane.xlu0 %769  ;;  %v773_v59 = vpop.xlane.xlu1 %772 }
 0x2b8   :  { %5425 = vpow2.f32 %v781_v57  ;;  %v778_v60 = vsub.f32 %v761_v47, %v770_v58  ;;  %v779_v61 = vsub.f32 %v762_v50, %v773_v59 }
 0x2ba   :  { %v783_v62 = vmul.f32 1.442695, %v778_v60  ;;  %v785_v63 = vmul.f32 1.442695, %v779_v61 }
 0x2bb   :  { %v776_v2 = vpop.xlane.xlu1 %775 }
 0x2bc   :  { %5427 = vpow2.f32 %v783_v62  ;;  %v780_v3 = vsub.f32 %v763_v53, %v776_v2  ;;  %v137_v62 = vld [vmem:[#allocation7] sm:$0xff] }
 0x2bd   :  { %5429 = vpow2.f32 %v785_v63  ;;  %v138_v63 = vld [vmem:[#allocation7 + $0x8] sm:$0xff] }
 0x2be   :  { %v787_v4 = vmul.f32 1.442695, %v780_v3  ;;  %v5334_v2 = vpack.c.bf16 %v138_v63, %v137_v62  ;;  %v139_v3 = vld [vmem:[#allocation7 + $0x10] sm:$0xff] }
 0x2bf   :  { %v149_v63 = vld [vmem:[#allocation10] sm:$0xff] }
 0x2c0   :  { %5431 = vpow2.f32 %v787_v4  ;;  %v140_v4 = vld [vmem:[#allocation7 + $0x18] sm:$0xff] }
 0x2c2   :  { %v5426_v5 = vpop.eup %5425 }
 0x2c3   :  { %v789_v6 = vsel %vm764_vm3, %v5426_v5, 0.0 }
 0x2c4   :  { %790 = vadd.xlane.f32.xlu0 %v789_v6 }
 0x2c6   :  { %v5428_v7 = vpop.eup %5427 }
 0x2c7   :  { %v5430_v8 = vpop.eup %5429  ;;  %v792_v9 = vsel %vm764_vm3, %v5428_v7, 0.0 }
 0x2c8   :  { %793 = vadd.xlane.f32.xlu1 %v792_v9  ;;  %v795_v10 = vsel %vm764_vm3, %v5430_v8, 0.0 }
 0x2c9   :  { %796 = vadd.xlane.f32.xlu0 %v795_v10 }
 0x2ca   :  { %v5432_v11 = vpop.eup %5431 }
 0x2cb   :  { %v798_v13 = vsel %vm764_vm3, %v5432_v11, 0.0 }
 0x2cc   :  { %799 = vadd.xlane.f32.xlu1 %v798_v13 }
 0x351   :  { %v791_v14 = vpop.xlane.xlu0 %790 }
 0x352   :  { %5433 = vrcp.f32 %v791_v14 }
 0x355   :  { %v794_v15 = vpop.xlane.xlu1 %793 }
 0x356   :  { %v797_v16 = vpop.xlane.xlu0 %796  ;;  %5435 = vrcp.f32 %v794_v15 }
 0x357   :  { %5437 = vrcp.f32 %v797_v16 }
 0x359   :  { %v800_v17 = vpop.xlane.xlu1 %799 }
 0x35a   :  { %5439 = vrcp.f32 %v800_v17 }
 0x35c   :  { %v5434_v18 = vpop.eup %5433 }
 0x35d   :  { %v805_v19 = vmul.f32 %v5434_v18, %v5426_v5  ;;  %v5337_v5 = vpack.c.bf16 %v140_v4, %v139_v3  ;;  %v4771_v4 = vld [vmem:[%s6340_s6] ss:$0 sm:$0xff] }
 0x35f   :  { %5042 = vmatmul.mubr.msk.f32.vlgmr.msra.gmra.mrb[8].mxu0 %vm764_vm3, %v805_v19 }
 0x360   :  { %v5436_v20 = vpop.eup %5435  ;;  %5050 = vmatpush3.msra.mxu0 %v5868_v26  ;;  %5051 = vmatprep.mubr.msk.f32.mxu0 %vm5678_vm0, %v5679_v1 }
 0x361   :  { %v5438_v21 = vpop.eup %5437  ;;  %v806_v22 = vmul.f32 %v5436_v20, %v5428_v7  ;;  %5333 = vmatprep.subr.bf16.mxu0 %v5677_v0  ;;  %v5948_v20 = vld [vmem:[%s6343_s9] ss:$0 sm:$0xff] }
 0x362   :  { %v807_v23 = vmul.f32 %v5438_v21, %v5430_v8 }
 0x363   :  { %5047 = vmatmul.mubr.msk.f32.vlgmr.msra.gmra.mrb[8].mxu1 %vm764_vm3, %v806_v22  ;;  %v141_v22 = vld [vmem:[#allocation7 + $0x20] sm:$0xff] }
 0x364   :  { %v5440_v24 = vpop.eup %5439  ;;  %5052 = vmatmul.mubr.msk.f32.vlgmr.msra.gmra.mrb[10].mxu0 %vm764_vm3, %v807_v23  ;;  %5055 = vmatpush3.msra.mxu1 %v5871_v29  ;;  %v142_v23 = vld [vmem:[#allocation7 + $0x28] sm:$0xff] }
 0x365   :  { %v808_v25 = vmul.f32 %v5440_v24, %v5432_v11  ;;  %5056 = vmatprep.mubr.msk.f32.mxu1 %vm5678_vm0, %v5679_v1  ;;  %5063 = vmatprep.mubr.msk.f32.mxu0 %vm5678_vm0, %v5679_v1  ;;  %v5953_v24 = vld [vmem:[%s6344_s10] ss:$0 sm:$0xff] }
 0x366   :  { %5336 = vmatprep.subr.bf16.mxu1 %v5677_v0  ;;  %5335 = vmatpush3.bf16.msra.mxu0 %v5334_v2  ;;  %v150_v2 = vld [vmem:[#allocation10 + $0x8] sm:$0xff] }
 0x367   :  { %5057 = vmatmul.mubr.msk.f32.vlgmr.msra.gmra.mrb[10].mxu1 %vm764_vm3, %v808_v25  ;;  %5339 = vmatprep.subr.bf16.mxu0 %v5677_v0  ;;  %v5349_v3 = vpack.c.bf16 %v150_v2, %v149_v63 }
 0x368   :  { %5070 = vmatprep.mubr.msk.f32.mxu1 %vm5678_vm0, %v5679_v1  ;;  %5338 = vmatpush3.bf16.msra.mxu1 %v5337_v5 }
 0x369   :  { %5342 = vmatprep.subr.bf16.mxu1 %v5677_v0 }
 0x432   :  { %v878_v26 = vpop.f32.mrb[8].mxu0 }
 0x433   :  { %v879_v27 = vadd.f32 %v878_v26, %v5831_v12  ;;  %v5043_v28 = vpop.f32.mrb[9].mxu0 }
 0x435   :  { %v1101_v29 = vsel %vm178_vm1, %v879_v27, 0.0 }
 0x436   :  { %v951_v30 = vpop.f32.mrb[8].mxu1  ;;  %1102 = vadd.xlane.f32.xlu0 %v1101_v29 }
 0x437   :  { %v952_v31 = vadd.f32 %v951_v30, %v5831_v12  ;;  %v1024_v32 = vpop.f32.mrb[10].mxu0  ;;  %v5048_v33 = vpop.f32.mrb[9].mxu1 }
 0x438   :  { %v1025_v34 = vadd.f32 %v1024_v32, %v5831_v12  ;;  %v5053_v36 = vpop.f32.mrb[11].mxu0  ;;  %v144_v32 = vld [vmem:[#allocation7 + $0x38] sm:$0xff] }
 0x439   :  { %v1104_v37 = vsel %vm178_vm1, %v952_v31, 0.0 }
 0x43a   :  { %1105 = vadd.xlane.f32.xlu1 %v1104_v37  ;;  %v1097_v38 = vpop.f32.mrb[10].mxu1  ;;  %v1107_v39 = vsel %vm178_vm1, %v1025_v34, 0.0 }
 0x43b   :  { %v1098_v40 = vadd.f32 %v1097_v38, %v5831_v12  ;;  %1108 = vadd.xlane.f32.xlu0 %v1107_v39  ;;  %v5058_v41 = vpop.f32.mrb[11].mxu1 }
 0x43d   :  { %v1110_v42 = vsel %vm178_vm1, %v1098_v40, 0.0 }
 0x43e   :  { %1111 = vadd.xlane.f32.xlu1 %v1110_v42 }
 0x4c3   :  { %v1103_v43 = vpop.xlane.xlu0 %1102 }
 0x4c4   :  { %v1114_v44 = vmul.f32 0.0625, %v1103_v43 }
 0x4c6   :  { %v1118_v45 = vsub.f32 %v879_v27, %v1114_v44  ;;  %v5340_v27 = vpack.c.bf16 %v142_v23, %v141_v22  ;;  %v146_v44 = vld [vmem:[#allocation8] sm:$0xff]  ;;  %v1657_v23 = vld [vmem:[#allocation5 + $0x48] sm:$0xff] }
 0x4c7   :  { %v1106_v46 = vpop.xlane.xlu1 %1105  ;;  %v1656_v22 = vld [vmem:[#allocation5 + $0x40] sm:$0xff] }
 0x4c8   :  { %v1115_v47 = vmul.f32 0.0625, %v1106_v46  ;;  %v1109_v48 = vpop.xlane.xlu0 %1108  ;;  %v1122_v49 = vmul.f32 %v1118_v45, %v1118_v45 }
 0x4c9   :  { %v1116_v50 = vmul.f32 0.0625, %v1109_v48 }
 0x4ca   :  { %v1119_v51 = vsub.f32 %v952_v31, %v1115_v47  ;;  %v1126_v52 = vsel %vm178_vm1, %v1122_v49, 0.0  ;;  %v143_v31 = vld [vmem:[#allocation7 + $0x30] sm:$0xff] }
 0x4cb   :  { %v1120_v53 = vsub.f32 %v1025_v34, %v1116_v50  ;;  %v1112_v54 = vpop.xlane.xlu1 %1111  ;;  %1127 = vadd.xlane.f32.xlu0 %v1126_v52  ;;  %v5343_v38 = vpack.c.bf16 %v144_v32, %v143_v31 }
 0x4cc   :  { %v1117_v12 = vmul.f32 0.0625, %v1112_v54  ;;  %v1123_v55 = vmul.f32 %v1119_v51, %v1119_v51 }
 0x4cd   :  { %v1124_v56 = vmul.f32 %v1120_v53, %v1120_v53 }
 0x4ce   :  { %v1121_v57 = vsub.f32 %v1098_v40, %v1117_v12  ;;  %v1129_v58 = vsel %vm178_vm1, %v1123_v55, 0.0 }
 0x4cf   :  { %1130 = vadd.xlane.f32.xlu1 %v1129_v58  ;;  %v1132_v59 = vsel %vm178_vm1, %v1124_v56, 0.0  ;;  %v4770_v58 = vld [vmem:[%s6338_s4] ss:$0 sm:$0xff] }
 0x4d0   :  { %1133 = vadd.xlane.f32.xlu0 %v1132_v59  ;;  %v1125_v60 = vmul.f32 %v1121_v57, %v1121_v57 }
 0x4d2   :  { %v1135_v61 = vsel %vm178_vm1, %v1125_v60, 0.0 }
 0x4d3   :  { %1136 = vadd.xlane.f32.xlu1 %v1135_v61 }
 0x558   :  { %v1128_v6 = vpop.xlane.xlu0 %1127 }
 0x559   :  { %v1138_v7 = vmul.f32 0.0625, %v1128_v6 }
 0x55b   :  { %v1142_v8 = vadd.f32 1e-05, %v1138_v7 }
 0x55c   :  { %v1131_v9 = vpop.xlane.xlu1 %1130 }
 0x55d   :  { %5441 = vrsqrt.f32 %v1142_v8  ;;  %v1139_v10 = vmul.f32 0.0625, %v1131_v9  ;;  %v1134_v11 = vpop.xlane.xlu0 %1133  ;;  %v4773_v9 = vld [vmem:[#allocation11] ss:$0 sm:$0xff] }
 0x55e   :  { %v1140_v13 = vmul.f32 0.0625, %v1134_v11 }
 0x55f   :  { %v1143_v14 = vadd.f32 1e-05, %v1139_v10 }
 0x560   :  { %v1144_v15 = vadd.f32 1e-05, %v1140_v13  ;;  %v1137_v16 = vpop.xlane.xlu1 %1136 }
 0x561   :  { %5443 = vrsqrt.f32 %v1143_v14  ;;  %v1141_v17 = vmul.f32 0.0625, %v1137_v16 }
 0x562   :  { %5445 = vrsqrt.f32 %v1144_v15 }
 0x563   :  { %v1145_v18 = vadd.f32 1e-05, %v1141_v17 }
 0x565   :  { %5447 = vrsqrt.f32 %v1145_v18 }
 0x567   :  { %v5442_v19 = vpop.eup %5441 }
 0x568   :  { %v1150_v21 = vmul.f32 %v5442_v19, %v1118_v45  ;;  %v147_v45 = vld [vmem:[#allocation8 + $0x8] sm:$0xff] }
 0x569   :  { %v5346_v46 = vpack.c.bf16 %v147_v45, %v146_v44 }
 0x56a   :  { %v1160_v25 = vmul.f32 %v5948_v20, %v1150_v21 }
 0x56b   :  { %v5444_v26 = vpop.eup %5443 }
 0x56c   :  { %v5446_v28 = vpop.eup %5445  ;;  %v1151_v29 = vmul.f32 %v5444_v26, %v1119_v51  ;;  %v1170_v30 = vadd.f32 %v5953_v24, %v1160_v25  ;;  %v1658_v25 = vld [vmem:[#allocation5 + $0x50] sm:$0xff]  ;;  %v5352_v26 = vpack.c.bf16 %v1657_v23, %v1656_v22 }
 0x56d   :  { %v1152_v33 = vmul.f32 %v5446_v28, %v1120_v53 }
 0x56e   :  { %5064 = vmatmul.mubr.msk.f32.vlgmr.msra.gmra.mrb[12].mxu0 %vm178_vm1, %v1170_v30  ;;  %v1161_v34 = vmul.f32 %v5948_v20, %v1151_v29 }
 0x56f   :  { %v5448_v36 = vpop.eup %5447  ;;  %5341 = vmatpush3.bf16.msra.mxu0 %v5340_v27  ;;  %5077 = vmatprep.mubr.msk.f32.mxu0 %vm5678_vm0, %v5679_v1  ;;  %v1162_v37 = vmul.f32 %v5948_v20, %v1152_v33  ;;  %v1659_v27 = vld [vmem:[#allocation5 + $0x58] sm:$0xff]  ;;  %v1660_v33 = vld [vmem:[#allocation5 + $0x60] sm:$0xff] }
 0x570   :  { %v1153_v39 = vmul.f32 %v5448_v36, %v1121_v57  ;;  %v1171_v40 = vadd.f32 %v5953_v24, %v1161_v34  ;;  %5345 = vmatprep.subr.bf16.mxu0 %v5677_v0  ;;  %v5355_v28 = vpack.c.bf16 %v1659_v27, %v1658_v25  ;;  %v1661_v36 = vld [vmem:[#allocation5 + $0x68] sm:$0xff] }
 0x571   :  { %v1172_v41 = vadd.f32 %v5953_v24, %v1162_v37  ;;  %v1662_v37 = vld [vmem:[#allocation5 + $0x70] sm:$0xff] }
 0x572   :  { %5071 = vmatmul.mubr.msk.f32.vlgmr.msra.gmra.mrb[12].mxu1 %vm178_vm1, %v1171_v40  ;;  %v1163_v42 = vmul.f32 %v5948_v20, %v1153_v39  ;;  %v5358_v40 = vpack.c.bf16 %v1661_v36, %v1660_v33 }
 0x573   :  { %5078 = vmatmul.mubr.msk.f32.vlgmr.msra.gmra.mrb[14].mxu0 %vm178_vm1, %v1172_v41  ;;  %5344 = vmatpush3.bf16.msra.mxu1 %v5343_v38  ;;  %v1663_v38 = vld [vmem:[#allocation5 + $0x78] sm:$0xff] }
 0x574   :  { %5084 = vmatprep.mubr.msk.f32.mxu1 %vm5678_vm0, %v5679_v1  ;;  %v1173_v43 = vadd.f32 %v5953_v24, %v1163_v42  ;;  %5091 = vmatprep.mubr.msk.f32.mxu0 %vm5678_vm0, %v5679_v1  ;;  %v5361_v41 = vpack.c.bf16 %v1663_v38, %v1662_v37 }
 0x575   :  { %5348 = vmatprep.subr.bf16.mxu1 %v5677_v0  ;;  %5347 = vmatpush3.bf16.msra.mxu0 %v5346_v46 }
 0x576   :  { %5085 = vmatmul.mubr.msk.f32.vlgmr.msra.gmra.mrb[14].mxu1 %vm178_vm1, %v1173_v43  ;;  %5351 = vmatprep.subr.bf16.mxu0 %v5677_v0 }
 0x577   :  { %5098 = vmatprep.mubr.msk.f32.mxu1 %vm5678_vm0, %v5679_v1  ;;  %5350 = vmatpush3.bf16.msra.mxu1 %v5349_v3 }
 0x578   :  { %5354 = vmatprep.subr.bf16.mxu1 %v5677_v0 }
 0x641   :  { %v1243_v47 = vpop.f32.mrb[12].mxu0 }
 0x642   :  { %v5065_v48 = vpop.f32.mrb[13].mxu0  ;;  %v1466_v50 = vsel %vm178_vm1, %v1243_v47, 0.0 }
 0x645   :  { %v1316_v49 = vpop.f32.mrb[12].mxu1 }
 0x646   :  { %v1467_v51 = vsel %vm178_vm1, %v1316_v49, 0.0  ;;  %v1389_v52 = vpop.f32.mrb[14].mxu0  ;;  %v5072_v53 = vpop.f32.mrb[13].mxu1  ;;  %v4785_v49 = vld [vmem:[%s6336_s2 + $0x6] ss:$0 sm:$0xff] }
 0x647   :  { %v1468_v54 = vadd.f32 %v1467_v51, %v1466_v50  ;;  %v5079_v12 = vpop.f32.mrb[15].mxu0  ;;  %v1469_v55 = vsel %vm178_vm1, %v1389_v52, 0.0  ;;  %v4786_v50 = vld [vmem:[%s6336_s2 + $0x7] ss:$0 sm:$0xff] }
 0x649   :  { %v1470_v56 = vadd.f32 %v1469_v55, %v1468_v54  ;;  %v1462_v57 = vpop.f32.mrb[14].mxu1 }
 0x64a   :  { %v1471_v59 = vsel %vm178_vm1, %v1462_v57, 0.0  ;;  %v5086_v60 = vpop.f32.mrb[15].mxu1 }
 0x64b   :  { %v1472_v61 = vadd.f32 %v1471_v59, %v1470_v56 }
 0x64d   :  { %v1479_v62 = vadd.f32 %v4770_v58, %v1472_v61 }
 0x64f   :  { %5092 = vmatmul.mubr.msk.f32.vlgmr.msra.gmra.mrb[16].mxu0 %vm178_vm1, %v1479_v62 }
 0x650   :  { %5105 = vmatprep.mubr.msk.f32.mxu0 %vm5678_vm0, %v5679_v1  ;;  %5353 = vmatpush3.bf16.msra.mxu0 %v5352_v26 }
 0x651   :  { %5357 = vmatprep.subr.bf16.mxu0 %v5677_v0 }
 0x722   :  { %v1555_v5 = vpop.f32.mrb[16].mxu0 }
 0x723   :  { %v1556_v6 = vadd.f32 %v4771_v4, %v1555_v5  ;;  %v5093_v7 = vpop.f32.mrb[17].mxu0 }
 0x725   :  { %v1559_v8 = vmax.f32 %v1556_v6, 0.0 }
 0x727   :  { %5099 = vmatmul.mubr.msk.f32.vlgmr.msra.gmra.mrb[16].mxu1 %vm178_vm1, %v1559_v8 }
 0x728   :  { %5112 = vmatprep.mubr.msk.f32.mxu1 %vm5678_vm0, %v5679_v1  ;;  %5356 = vmatpush3.bf16.msra.mxu1 %v5355_v28 }
 0x729   :  { %5360 = vmatprep.subr.bf16.mxu1 %v5677_v0 }
 0x7fa   :  { %v1635_v10 = vpop.f32.mrb[16].mxu1 }
 0x7fb   :  { %v1636_v11 = vadd.f32 %v4773_v9, %v1635_v10  ;;  %v5100_v13 = vpop.f32.mrb[17].mxu1 }
 0x7fd   :  { %v1639_v14 = vadd.f32 %v1636_v11, %v1479_v62 }
 0x7ff   :  { %v1640_v15 = vsel %vm178_vm1, %v1639_v14, 0.0 }
 0x800   :  { %1641 = vadd.xlane.f32.xlu0 %v1640_v15 }
 0x88d   :  { %v1642_v16 = vpop.xlane.xlu0 %1641 }
 0x88e   :  { %v1643_v17 = vmul.f32 0.0625, %v1642_v16 }
 0x890   :  { %v1644_v18 = vsub.f32 %v1639_v14, %v1643_v17 }
 0x892   :  { %v1645_v19 = vmul.f32 %v1644_v18, %v1644_v18 }
 0x894   :  { %v1646_v21 = vsel %vm178_vm1, %v1645_v19, 0.0 }
 0x895   :  { %1647 = vadd.xlane.f32.xlu1 %v1646_v21 }
 0x922   :  { %v1648_v29 = vpop.xlane.xlu1 %1647 }
 0x923   :  { %v1649_v30 = vmul.f32 0.0625, %v1648_v29 }
 0x925   :  { %v1650_v31 = vadd.f32 1e-05, %v1649_v30 }
 0x927   :  { %5449 = vrsqrt.f32 %v1650_v31 }
 0x931   :  { %v5450_v32 = vpop.eup %5449 }
 0x932   :  { %v1652_v34 = vmul.f32 %v5450_v32, %v1644_v18 }
 0x934   :  { %v1653_v39 = vmul.f32 %v5948_v20, %v1652_v34  ;;  %v4783_v20 = vld [vmem:[%s6336_s2 + $0x4] ss:$0 sm:$0xff] }
 0x936   :  { %v6001_v42 = vadd.f32 %v5953_v24, %v1653_v39  ;;  %v4784_v24 = vld [vmem:[%s6336_s2 + $0x5] ss:$0 sm:$0xff] }
 0x938   :  { %5106 = vmatmul.mubr.msk.f32.vlgmr.msra.gmra.mrb[18].mxu0 %vm178_vm1, %v6001_v42  ;;  %5113 = vmatmul.mubr.msk.f32.vlgmr.msra.gmra.mrb[18].mxu1 %vm178_vm1, %v6001_v42 }
 0x939   :  { %5359 = vmatpush3.bf16.msra.mxu0 %v5358_v40  ;;  %5362 = vmatpush3.bf16.msra.mxu1 %v5361_v41 }
 0x93a   :  { %5119 = vmatprep.mubr.msk.f32.mxu0 %vm5678_vm0, %v5679_v1  ;;  %5126 = vmatprep.mubr.msk.f32.mxu1 %vm5678_vm0, %v5679_v1 }
 0x93b   :  { %5129 = vmatprep.subr.mxu0 %v5679_v1  ;;  %5134 = vmatprep.subr.mxu1 %v5679_v1 }
 0x93c   :  { %5120 = vmatmul.mubr.msk.f32.vlgmr.msra.gmra.mrb[20].mxu0 %vm178_vm1, %v6001_v42  ;;  %5127 = vmatmul.mubr.msk.f32.vlgmr.msra.gmra.mrb[20].mxu1 %vm178_vm1, %v6001_v42 }
 0x93d   :  { %5131 = vmatprep.mubr.msk.f32.mxu0 %vm5678_vm0, %v5679_v1  ;;  %5136 = vmatprep.mubr.msk.f32.mxu1 %vm5678_vm0, %v5679_v1 }
 0xa0b   :  { %v1787_v43 = vpop.f32.mrb[18].mxu0  ;;  %v1857_v44 = vpop.f32.mrb[18].mxu1 }
 0xa0c   :  { %v1788_v45 = vadd.f32 %v4783_v20, %v1787_v43  ;;  %v1858_v46 = vadd.f32 %v4784_v24, %v1857_v44  ;;  %v5107_v47 = vpop.f32.mrb[19].mxu0  ;;  %v5114_v48 = vpop.f32.mrb[19].mxu1 }
 0xa0e   :  { %5130 = vmatpush3.xpose.msk.msra.mxu0 %vm178_vm1, %v1788_v45  ;;  %5135 = vmatpush3.xpose.msk.msra.mxu1 %vm178_vm1, %v1858_v46 }
 0xa0f   :  { %v1927_v51 = vpop.f32.mrb[20].mxu0  ;;  %v1997_v52 = vpop.f32.mrb[20].mxu1  ;;  %5139 = vmatprep.subr.mxu0 %v5679_v1  ;;  %5144 = vmatprep.subr.mxu1 %v5679_v1 }
 0xa10   :  { %v6037_v53 = vadd.f32 %v4785_v49, %v1927_v51  ;;  %v6039_v54 = vadd.f32 %v4786_v50, %v1997_v52  ;;  %v5121_v12 = vpop.f32.mrb[21].mxu0  ;;  %v5128_v55 = vpop.f32.mrb[21].mxu1 }
 0xa11   :  { %5132 = vmatmul.mubr.msk.f32.vlgmr.msra.gmra.mrb[22].mxu0 %vm178_vm1, %v1788_v45  ;;  %5137 = vmatmul.mubr.msk.f32.vlgmr.msra.gmra.mrb[22].mxu1 %vm178_vm1, %v1858_v46 }
 0xa12   :  { %5140 = vmatpush3.xpose.msk.msra.mxu0 %vm178_vm1, %v6037_v53  ;;  %5145 = vmatpush3.xpose.msk.msra.mxu1 %vm178_vm1, %v6039_v54 }
 0xa13   :  { %5141 = vmatprep.mubr.msk.f32.mxu0 %vm5678_vm0, %v5679_v1  ;;  %5146 = vmatprep.mubr.msk.f32.mxu1 %vm5678_vm0, %v5679_v1 }
 0xa14   :  { %5149 = vmatprep.subr.mxu0 %v5679_v1  ;;  %5154 = vmatprep.subr.mxu1 %v5679_v1 }
 0xa15   :  { %5142 = vmatmul.mubr.msk.f32.vlgmr.msra.gmra.mrb[24].mxu0 %vm178_vm1, %v6037_v53  ;;  %5147 = vmatmul.mubr.msk.f32.vlgmr.msra.gmra.mrb[24].mxu1 %vm178_vm1, %v6039_v54 }
 0xa16   :  { %5150 = vmatpush3.msra.mxu0 %v1788_v45  ;;  %5155 = vmatpush3.msra.mxu1 %v1858_v46 }
 0xa17   :  { %5151 = vmatprep.mubr.msk.f32.mxu0 %vm5678_vm0, %v5679_v1  ;;  %5156 = vmatprep.mubr.msk.f32.mxu1 %vm5678_vm0, %v5679_v1 }
 0xa18   :  { %5159 = vmatprep.subr.mxu0 %v5679_v1  ;;  %5164 = vmatprep.subr.mxu1 %v5679_v1 }
 0xae4   :  { %v2070_v56 = vpop.f32.mrb[22].mxu0  ;;  %v2143_v57 = vpop.f32.mrb[22].mxu1 }
 0xae5   :  { %v2293_v58 = vmul.f32 0.25, %v2070_v56  ;;  %v2294_v59 = vmul.f32 0.25, %v2143_v57  ;;  %v5133_v60 = vpop.f32.mrb[23].mxu0  ;;  %v5138_v61 = vpop.f32.mrb[23].mxu1 }
 0xae7   :  { %v2298_v62 = vsel %vm5895_vm2, %v2294_v59, -1e+30  ;;  %v2297_v63 = vsel %vm5895_vm2, %v2293_v58, -1e+30 }
 0xae8   :  { %v2216_v2 = vpop.f32.mrb[24].mxu0  ;;  %v2289_v3 = vpop.f32.mrb[24].mxu1  ;;  %v2304_v4 = vsel %vm764_vm3, %v2298_v62, -inf  ;;  %v2301_v5 = vsel %vm764_vm3, %v2297_v63, -inf }
 0xae9   :  { %v2295_v6 = vmul.f32 0.25, %v2216_v2  ;;  %v2296_v7 = vmul.f32 0.25, %v2289_v3  ;;  %2305 = vmax.xlane.f32.xlu1 %v2304_v4  ;;  %v5148_v8 = vpop.f32.mrb[25].mxu1  ;;  %2302 = vmax.xlane.f32.xlu0 %v2301_v5  ;;  %v5143_v9 = vpop.f32.mrb[25].mxu0 }
 0xaeb   :  { %v2300_v10 = vsel %vm5895_vm2, %v2296_v7, -1e+30  ;;  %v2299_v11 = vsel %vm5895_vm2, %v2295_v6, -1e+30 }
 0xaec   :  { %v2310_v13 = vsel %vm764_vm3, %v2300_v10, -inf  ;;  %v2307_v14 = vsel %vm764_vm3, %v2299_v11, -inf }
 0xaed   :  { %2311 = vmax.xlane.f32.xlu1 %v2310_v13  ;;  %2308 = vmax.xlane.f32.xlu0 %v2307_v14 }
 0xb76   :  { %v2306_v15 = vpop.xlane.xlu1 %2305  ;;  %v2303_v16 = vpop.xlane.xlu0 %2302 }
 0xb77   :  { %v2314_v17 = vsub.f32 %v2298_v62, %v2306_v15  ;;  %v2313_v18 = vsub.f32 %v2297_v63, %v2303_v16 }
 0xb79   :  { %v2319_v19 = vmul.f32 1.442695, %v2314_v17  ;;  %v2317_v21 = vmul.f32 1.442695, %v2313_v18 }
 0xb7a   :  { %v2312_v22 = vpop.xlane.xlu1 %2311  ;;  %v2309_v23 = vpop.xlane.xlu0 %2308 }
 0xb7b   :  { %5451 = vpow2.f32 %v2319_v19  ;;  %v2316_v25 = vsub.f32 %v2300_v10, %v2312_v22  ;;  %v2315_v26 = vsub.f32 %v2299_v11, %v2309_v23  ;;  %v1670_v23 = vld [vmem:[#allocation7 + $0x40] sm:$0xff] }
 0xb7c   :  { %5453 = vpow2.f32 %v2317_v21 }
 0xb7d   :  { %v2323_v27 = vmul.f32 1.442695, %v2316_v25  ;;  %v2321_v28 = vmul.f32 1.442695, %v2315_v26  ;;  %v1671_v25 = vld [vmem:[#allocation7 + $0x48] sm:$0xff]  ;;  %v1672_v26 = vld [vmem:[#allocation7 + $0x50] sm:$0xff] }
 0xb7f   :  { %5455 = vpow2.f32 %v2323_v27  ;;  %v5364_v27 = vpack.c.bf16 %v1671_v25, %v1670_v23  ;;  %v1686_v25 = vld [vmem:[#allocation10 + $0x10] sm:$0xff] }
 0xb80   :  { %5457 = vpow2.f32 %v2321_v28  ;;  %v1673_v28 = vld [vmem:[#allocation7 + $0x58] sm:$0xff] }
 0xb85   :  { %v5452_v29 = vpop.eup %5451 }
 0xb86   :  { %v5454_v30 = vpop.eup %5453  ;;  %v2328_v31 = vsel %vm764_vm3, %v5452_v29, 0.0 }
 0xb87   :  { %2329 = vadd.xlane.f32.xlu1 %v2328_v31  ;;  %v2325_v32 = vsel %vm764_vm3, %v5454_v30, 0.0 }
 0xb88   :  { %2326 = vadd.xlane.f32.xlu0 %v2325_v32 }
 0xb89   :  { %v5456_v33 = vpop.eup %5455 }
 0xb8a   :  { %v5458_v34 = vpop.eup %5457  ;;  %v2334_v36 = vsel %vm764_vm3, %v5456_v33, 0.0 }
 0xb8b   :  { %2335 = vadd.xlane.f32.xlu1 %v2334_v36  ;;  %v2331_v37 = vsel %vm764_vm3, %v5458_v34, 0.0 }
 0xb8c   :  { %2332 = vadd.xlane.f32.xlu0 %v2331_v37 }
 0xc14   :  { %v2330_v38 = vpop.xlane.xlu1 %2329 }
 0xc15   :  { %5459 = vrcp.f32 %v2330_v38  ;;  %v2327_v39 = vpop.xlane.xlu0 %2326 }
 0xc16   :  { %5461 = vrcp.f32 %v2327_v39 }
 0xc18   :  { %v2336_v40 = vpop.xlane.xlu1 %2335 }
 0xc19   :  { %5463 = vrcp.f32 %v2336_v40  ;;  %v2333_v41 = vpop.xlane.xlu0 %2332 }
 0xc1a   :  { %5465 = vrcp.f32 %v2333_v41 }
 0xc1f   :  { %v5460_v20 = vpop.eup %5459 }
 0xc20   :  { %v5462_v24 = vpop.eup %5461  ;;  %v2342_v43 = vmul.f32 %v5460_v20, %v5452_v29  ;;  %v5367_v29 = vpack.c.bf16 %v1673_v28, %v1672_v26  ;;  %v1687_v26 = vld [vmem:[#allocation10 + $0x18] sm:$0xff] }
 0xc21   :  { %v2341_v44 = vmul.f32 %v5462_v24, %v5454_v30  ;;  %v4810_v28 = vld [vmem:[%s6340_s6 + $0x1] ss:$0 sm:$0xff] }
 0xc22   :  { %5157 = vmatmul.mubr.msk.f32.vlgmr.msra.gmra.mrb[26].mxu1 %vm764_vm3, %v2342_v43  ;;  %v6112_v43 = vld [vmem:[%s6343_s9 + $0x1] ss:$0 sm:$0xff] }
 0xc23   :  { %v5464_v45 = vpop.eup %5463  ;;  %5152 = vmatmul.mubr.msk.f32.vlgmr.msra.gmra.mrb[26].mxu0 %vm764_vm3, %v2341_v44  ;;  %5165 = vmatpush3.msra.mxu1 %v6039_v54 }
 0xc24   :  { %v5466_v46 = vpop.eup %5465  ;;  %v2344_v47 = vmul.f32 %v5464_v45, %v5456_v33  ;;  %5160 = vmatpush3.msra.mxu0 %v6037_v53  ;;  %5161 = vmatprep.mubr.msk.f32.mxu0 %vm5678_vm0, %v5679_v1 }
 0xc25   :  { %v2343_v48 = vmul.f32 %v5466_v46, %v5458_v34  ;;  %5166 = vmatprep.mubr.msk.f32.mxu1 %vm5678_vm0, %v5679_v1  ;;  %5363 = vmatprep.subr.bf16.mxu0 %v5677_v0  ;;  %v1676_v46 = vld [vmem:[#allocation7 + $0x70] sm:$0xff] }
 0xc26   :  { %5167 = vmatmul.mubr.msk.f32.vlgmr.msra.gmra.mrb[28].mxu1 %vm764_vm3, %v2344_v47  ;;  %5366 = vmatprep.subr.bf16.mxu1 %v5677_v0  ;;  %v1677_v47 = vld [vmem:[#allocation7 + $0x78] sm:$0xff] }
 0xc27   :  { %5162 = vmatmul.mubr.msk.f32.vlgmr.msra.gmra.mrb[28].mxu0 %vm764_vm3, %v2343_v48  ;;  %5180 = vmatprep.mubr.msk.f32.mxu1 %vm5678_vm0, %v5679_v1 }
 0xc28   :  { %5173 = vmatprep.mubr.msk.f32.mxu0 %vm5678_vm0, %v5679_v1  ;;  %5365 = vmatpush3.bf16.msra.mxu0 %v5364_v27  ;;  %v5379_v27 = vpack.c.bf16 %v1687_v26, %v1686_v25 }
 0xc29   :  { %5368 = vmatpush3.bf16.msra.mxu1 %v5367_v29  ;;  %5369 = vmatprep.subr.bf16.mxu0 %v5677_v0 }
 0xc2a   :  { %5372 = vmatprep.subr.bf16.mxu1 %v5677_v0 }
 0xcf5   :  { %v2487_v49 = vpop.f32.mrb[26].mxu1 }
 0xcf6   :  { %v2414_v50 = vpop.f32.mrb[26].mxu0  ;;  %v2488_v51 = vadd.f32 %v2487_v49, %v6001_v42  ;;  %v5158_v52 = vpop.f32.mrb[27].mxu1  ;;  %v6117_v49 = vld [vmem:[%s6344_s10 + $0x1] ss:$0 sm:$0xff] }
 0xcf7   :  { %v2415_v53 = vadd.f32 %v2414_v50, %v6001_v42  ;;  %v5153_v54 = vpop.f32.mrb[27].mxu0  ;;  %v1674_v50 = vld [vmem:[#allocation7 + $0x60] sm:$0xff] }
 0xcf8   :  { %v2640_v12 = vsel %vm178_vm1, %v2488_v51, 0.0 }
 0xcf9   :  { %2641 = vadd.xlane.f32.xlu1 %v2640_v12  ;;  %v2633_v55 = vpop.f32.mrb[28].mxu1  ;;  %v2637_v56 = vsel %vm178_vm1, %v2415_v53, 0.0  ;;  %v5373_v12 = vpack.c.bf16 %v1677_v47, %v1676_v46  ;;  %v3192_v46 = vld [vmem:[#allocation5 + $0x88] sm:$0xff]  ;;  %v3193_v47 = vld [vmem:[#allocation5 + $0x90] sm:$0xff] }
 0xcfa   :  { %v2634_v57 = vadd.f32 %v2633_v55, %v6001_v42  ;;  %2638 = vadd.xlane.f32.xlu0 %v2637_v56  ;;  %v2560_v58 = vpop.f32.mrb[28].mxu0  ;;  %v5168_v59 = vpop.f32.mrb[29].mxu1 }
 0xcfb   :  { %v2561_v60 = vadd.f32 %v2560_v58, %v6001_v42  ;;  %v5163_v61 = vpop.f32.mrb[29].mxu0 }
 0xcfc   :  { %v2646_v62 = vsel %vm178_vm1, %v2634_v57, 0.0 }
 0xcfd   :  { %2647 = vadd.xlane.f32.xlu1 %v2646_v62  ;;  %v2643_v63 = vsel %vm178_vm1, %v2561_v60, 0.0 }
 0xcfe   :  { %2644 = vadd.xlane.f32.xlu0 %v2643_v63 }
 0xd86   :  { %v2642_v2 = vpop.xlane.xlu1 %2641 }
 0xd87   :  { %v2650_v3 = vmul.f32 0.0625, %v2642_v2  ;;  %v2639_v4 = vpop.xlane.xlu0 %2638 }
 0xd88   :  { %v2649_v5 = vmul.f32 0.0625, %v2639_v4  ;;  %v1682_v4 = vld [vmem:[#allocation8 + $0x18] sm:$0xff] }
 0xd89   :  { %v2654_v6 = vsub.f32 %v2488_v51, %v2650_v3  ;;  %v1675_v51 = vld [vmem:[#allocation7 + $0x68] sm:$0xff]  ;;  %v1681_v3 = vld [vmem:[#allocation8 + $0x10] sm:$0xff] }
 0xd8a   :  { %v2653_v7 = vsub.f32 %v2415_v53, %v2649_v5  ;;  %v2648_v8 = vpop.xlane.xlu1 %2647  ;;  %v5370_v58 = vpack.c.bf16 %v1675_v51, %v1674_v50  ;;  %v5376_v5 = vpack.c.bf16 %v1682_v4, %v1681_v3  ;;  %v3194_v50 = vld [vmem:[#allocation5 + $0x98] sm:$0xff] }
 0xd8b   :  { %v2652_v9 = vmul.f32 0.0625, %v2648_v8  ;;  %v2645_v10 = vpop.xlane.xlu0 %2644  ;;  %v2658_v11 = vmul.f32 %v2654_v6, %v2654_v6  ;;  %v5385_v51 = vpack.c.bf16 %v3194_v50, %v3193_v47 }
 0xd8c   :  { %v2651_v13 = vmul.f32 0.0625, %v2645_v10  ;;  %v2657_v14 = vmul.f32 %v2653_v7, %v2653_v7 }
 0xd8d   :  { %v2656_v42 = vsub.f32 %v2634_v57, %v2652_v9  ;;  %v2664_v15 = vsel %vm178_vm1, %v2658_v11, 0.0 }
 0xd8e   :  { %v2655_v16 = vsub.f32 %v2561_v60, %v2651_v13  ;;  %2665 = vadd.xlane.f32.xlu1 %v2664_v15  ;;  %v2661_v17 = vsel %vm178_vm1, %v2657_v14, 0.0 }
 0xd8f   :  { %2662 = vadd.xlane.f32.xlu0 %v2661_v17  ;;  %v2660_v18 = vmul.f32 %v2656_v42, %v2656_v42 }
 0xd90   :  { %v2659_v19 = vmul.f32 %v2655_v16, %v2655_v16 }
 0xd91   :  { %v2670_v21 = vsel %vm178_vm1, %v2660_v18, 0.0 }
 0xd92   :  { %2671 = vadd.xlane.f32.xlu1 %v2670_v21  ;;  %v2667_v22 = vsel %vm178_vm1, %v2659_v19, 0.0  ;;  %v4809_v19 = vld [vmem:[%s6338_s4 + $0x1] ss:$0 sm:$0xff] }
 0xd93   :  { %2668 = vadd.xlane.f32.xlu0 %v2667_v22 }
 0xe1b   :  { %v2666_v30 = vpop.xlane.xlu1 %2665 }
 0xe1c   :  { %v2674_v31 = vmul.f32 0.0625, %v2666_v30  ;;  %v2663_v32 = vpop.xlane.xlu0 %2662 }
 0xe1d   :  { %v2673_v33 = vmul.f32 0.0625, %v2663_v32 }
 0xe1e   :  { %v2678_v34 = vadd.f32 1e-05, %v2674_v31 }
 0xe1f   :  { %v2677_v36 = vadd.f32 1e-05, %v2673_v33  ;;  %v2672_v37 = vpop.xlane.xlu1 %2671  ;;  %v4812_v33 = vld [vmem:[#allocation11 + $0x1] ss:$0 sm:$0xff] }
 0xe20   :  { %5467 = vrsqrt.f32 %v2678_v34  ;;  %v2676_v38 = vmul.f32 0.0625, %v2672_v37  ;;  %v2669_v39 = vpop.xlane.xlu0 %2668 }
 0xe21   :  { %5469 = vrsqrt.f32 %v2677_v36  ;;  %v2675_v40 = vmul.f32 0.0625, %v2669_v39 }
 0xe22   :  { %v2680_v41 = vadd.f32 1e-05, %v2676_v38 }
 0xe23   :  { %v2679_v20 = vadd.f32 1e-05, %v2675_v40 }
 0xe24   :  { %5471 = vrsqrt.f32 %v2680_v41 }
 0xe25   :  { %5473 = vrsqrt.f32 %v2679_v20 }
 0xe2a   :  { %v5468_v24 = vpop.eup %5467 }
 0xe2b   :  { %v5470_v44 = vpop.eup %5469  ;;  %v2686_v45 = vmul.f32 %v5468_v24, %v2654_v6 }
 0xe2c   :  { %v2685_v48 = vmul.f32 %v5470_v44, %v2653_v7 }
 0xe2d   :  { %v2696_v52 = vmul.f32 %v6112_v43, %v2686_v45  ;;  %v3191_v45 = vld [vmem:[#allocation5 + $0x80] sm:$0xff] }
 0xe2e   :  { %v5472_v53 = vpop.eup %5471  ;;  %v2695_v54 = vmul.f32 %v6112_v43, %v2685_v48  ;;  %v5382_v48 = vpack.c.bf16 %v3192_v46, %v3191_v45 }
 0xe2f   :  { %v5474_v55 = vpop.eup %5473  ;;  %v2688_v56 = vmul.f32 %v5472_v53, %v2656_v42  ;;  %v2706_v57 = vadd.f32 %v6117_v49, %v2696_v52 }
 0xe30   :  { %v2687_v59 = vmul.f32 %v5474_v55, %v2655_v16  ;;  %v2705_v60 = vadd.f32 %v6117_v49, %v2695_v54  ;;  %v3195_v55 = vld [vmem:[#allocation5 + $0xa0] sm:$0xff] }
 0xe31   :  { %5181 = vmatmul.mubr.msk.f32.vlgmr.msra.gmra.mrb[30].mxu1 %vm178_vm1, %v2706_v57  ;;  %v2698_v61 = vmul.f32 %v6112_v43, %v2688_v56  ;;  %v3196_v57 = vld [vmem:[#allocation5 + $0xa8] sm:$0xff] }
 0xe32   :  { %5174 = vmatmul.mubr.msk.f32.vlgmr.msra.gmra.mrb[30].mxu0 %vm178_vm1, %v2705_v60  ;;  %5374 = vmatpush3.bf16.msra.mxu1 %v5373_v12  ;;  %v2697_v62 = vmul.f32 %v6112_v43, %v2687_v59  ;;  %v3198_v59 = vld [vmem:[#allocation5 + $0xb8] sm:$0xff] }
 0xe33   :  { %5371 = vmatpush3.bf16.msra.mxu0 %v5370_v58  ;;  %5187 = vmatprep.mubr.msk.f32.mxu0 %vm5678_vm0, %v5679_v1  ;;  %v2708_v63 = vadd.f32 %v6117_v49, %v2698_v61  ;;  %v3197_v58 = vld [vmem:[#allocation5 + $0xb0] sm:$0xff]  ;;  %v5388_v61 = vpack.c.bf16 %v3196_v57, %v3195_v55 }
 0xe34   :  { %5194 = vmatprep.mubr.msk.f32.mxu1 %vm5678_vm0, %v5679_v1  ;;  %v2707_v2 = vadd.f32 %v6117_v49, %v2697_v62  ;;  %5375 = vmatprep.subr.bf16.mxu0 %v5677_v0  ;;  %v5391_v62 = vpack.c.bf16 %v3198_v59, %v3197_v58 }
 0xe35   :  { %5195 = vmatmul.mubr.msk.f32.vlgmr.msra.gmra.mrb[32].mxu1 %vm178_vm1, %v2708_v63  ;;  %5378 = vmatprep.subr.bf16.mxu1 %v5677_v0 }
 0xe36   :  { %5188 = vmatmul.mubr.msk.f32.vlgmr.msra.gmra.mrb[32].mxu0 %vm178_vm1, %v2707_v2  ;;  %5208 = vmatprep.mubr.msk.f32.mxu1 %vm5678_vm0, %v5679_v1 }
 0xe37   :  { %5201 = vmatprep.mubr.msk.f32.mxu0 %vm5678_vm0, %v5679_v1  ;;  %5377 = vmatpush3.bf16.msra.mxu0 %v5376_v5 }
 0xe38   :  { %5381 = vmatprep.subr.bf16.mxu0 %v5677_v0  ;;  %5380 = vmatpush3.bf16.msra.mxu1 %v5379_v27 }
 0xe39   :  { %5384 = vmatprep.subr.bf16.mxu1 %v5677_v0 }
 0xf04   :  { %v2851_v6 = vpop.f32.mrb[30].mxu1 }
 0xf05   :  { %v2778_v7 = vpop.f32.mrb[30].mxu0  ;;  %v3002_v8 = vsel %vm178_vm1, %v2851_v6, 0.0  ;;  %v5182_v9 = vpop.f32.mrb[31].mxu1 }
 0xf06   :  { %v3001_v10 = vsel %vm178_vm1, %v2778_v7, 0.0  ;;  %v5175_v11 = vpop.f32.mrb[31].mxu0  ;;  %v4825_v9 = vld [vmem:[%s6336_s2 + $0xb] ss:$0 sm:$0xff] }
 0xf07   :  { %v3003_v13 = vadd.f32 %v3002_v8, %v3001_v10  ;;  %v4824_v8 = vld [vmem:[%s6336_s2 + $0xa] ss:$0 sm:$0xff] }
 0xf08   :  { %v2997_v14 = vpop.f32.mrb[32].mxu1 }
 0xf09   :  { %v2924_v42 = vpop.f32.mrb[32].mxu0  ;;  %v5196_v15 = vpop.f32.mrb[33].mxu1  ;;  %v3006_v21 = vsel %vm178_vm1, %v2997_v14, 0.0 }
 0xf0a   :  { %v3004_v16 = vsel %vm178_vm1, %v2924_v42, 0.0  ;;  %v5189_v17 = vpop.f32.mrb[33].mxu0 }
 0xf0b   :  { %v3005_v18 = vadd.f32 %v3004_v16, %v3003_v13 }
 0xf0d   :  { %v3007_v22 = vadd.f32 %v3006_v21, %v3005_v18 }
 0xf0f   :  { %v3014_v23 = vadd.f32 %v4809_v19, %v3007_v22 }
 0xf11   :  { %5202 = vmatmul.mubr.msk.f32.vlgmr.msra.gmra.mrb[34].mxu0 %vm178_vm1, %v3014_v23 }
 0xf12   :  { %5215 = vmatprep.mubr.msk.f32.mxu0 %vm5678_vm0, %v5679_v1  ;;  %5383 = vmatpush3.bf16.msra.mxu0 %v5382_v48 }
 0xf13   :  { %5387 = vmatprep.subr.bf16.mxu0 %v5677_v0 }
 0xfe4   :  { %v3090_v29 = vpop.f32.mrb[34].mxu0 }
 0xfe5   :  { %v3091_v30 = vadd.f32 %v4810_v28, %v3090_v29  ;;  %v5203_v31 = vpop.f32.mrb[35].mxu0 }
 0xfe7   :  { %v3094_v32 = vmax.f32 %v3091_v30, 0.0 }
 0xfe9   :  { %5209 = vmatmul.mubr.msk.f32.vlgmr.msra.gmra.mrb[34].mxu1 %vm178_vm1, %v3094_v32 }
 0xfea   :  { %5222 = vmatprep.mubr.msk.f32.mxu1 %vm5678_vm0, %v5679_v1  ;;  %5386 = vmatpush3.bf16.msra.mxu1 %v5385_v51 }
 0xfeb   :  { %5390 = vmatprep.subr.bf16.mxu1 %v5677_v0 }
0x10bc   :  { %v3170_v34 = vpop.f32.mrb[34].mxu1 }
0x10bd   :  { %v3171_v36 = vadd.f32 %v4812_v33, %v3170_v34  ;;  %v5210_v37 = vpop.f32.mrb[35].mxu1 }
0x10bf   :  { %v3174_v38 = vadd.f32 %v3171_v36, %v3014_v23 }
0x10c1   :  { %v3175_v39 = vsel %vm178_vm1, %v3174_v38, 0.0 }
0x10c2   :  { %3176 = vadd.xlane.f32.xlu0 %v3175_v39 }
0x114f   :  { %v3177_v40 = vpop.xlane.xlu0 %3176 }
0x1150   :  { %v3178_v41 = vmul.f32 0.0625, %v3177_v40 }
0x1152   :  { %v3179_v20 = vsub.f32 %v3174_v38, %v3178_v41 }
0x1154   :  { %v3180_v24 = vmul.f32 %v3179_v20, %v3179_v20 }
0x1156   :  { %v3181_v44 = vsel %vm178_vm1, %v3180_v24, 0.0 }
0x1157   :  { %3182 = vadd.xlane.f32.xlu1 %v3181_v44 }
0x11e4   :  { %v3183_v52 = vpop.xlane.xlu1 %3182 }
0x11e5   :  { %v3184_v53 = vmul.f32 0.0625, %v3183_v52 }
0x11e7   :  { %v3185_v54 = vadd.f32 1e-05, %v3184_v53 }
0x11e9   :  { %5475 = vrsqrt.f32 %v3185_v54 }
0x11f3   :  { %v5476_v12 = vpop.eup %5475 }
0x11f4   :  { %v3187_v56 = vmul.f32 %v5476_v12, %v3179_v20 }
0x11f6   :  { %v3188_v60 = vmul.f32 %v6112_v43, %v3187_v56  ;;  %v4822_v43 = vld [vmem:[%s6336_s2 + $0x8] ss:$0 sm:$0xff] }
0x11f8   :  { %v6165_v63 = vadd.f32 %v6117_v49, %v3188_v60  ;;  %v4823_v49 = vld [vmem:[%s6336_s2 + $0x9] ss:$0 sm:$0xff] }
0x11fa   :  { %5216 = vmatmul.mubr.msk.f32.vlgmr.msra.gmra.mrb[36].mxu0 %vm178_vm1, %v6165_v63  ;;  %5223 = vmatmul.mubr.msk.f32.vlgmr.msra.gmra.mrb[36].mxu1 %vm178_vm1, %v6165_v63 }
0x11fb   :  { %5389 = vmatpush3.bf16.msra.mxu0 %v5388_v61  ;;  %5392 = vmatpush3.bf16.msra.mxu1 %v5391_v62 }
0x11fc   :  { %5229 = vmatprep.mubr.msk.f32.mxu0 %vm5678_vm0, %v5679_v1  ;;  %5236 = vmatprep.mubr.msk.f32.mxu1 %vm5678_vm0, %v5679_v1 }
0x11fd   :  { %5239 = vmatprep.subr.mxu0 %v5679_v1  ;;  %5244 = vmatprep.subr.mxu1 %v5679_v1 }
0x11fe   :  { %5230 = vmatmul.mubr.msk.f32.vlgmr.msra.gmra.mrb[38].mxu0 %vm178_vm1, %v6165_v63  ;;  %5237 = vmatmul.mubr.msk.f32.vlgmr.msra.gmra.mrb[38].mxu1 %vm178_vm1, %v6165_v63 }
0x11ff   :  { %5241 = vmatprep.mubr.msk.f32.mxu0 %vm5678_vm0, %v5679_v1  ;;  %5246 = vmatprep.mubr.msk.f32.mxu1 %vm5678_vm0, %v5679_v1 }
0x12cd   :  { %v3322_v2 = vpop.f32.mrb[36].mxu0  ;;  %v3392_v3 = vpop.f32.mrb[36].mxu1 }
0x12ce   :  { %v3323_v4 = vadd.f32 %v4822_v43, %v3322_v2  ;;  %v3393_v5 = vadd.f32 %v4823_v49, %v3392_v3  ;;  %v5217_v6 = vpop.f32.mrb[37].mxu0  ;;  %v5224_v7 = vpop.f32.mrb[37].mxu1 }
0x12d0   :  { %5240 = vmatpush3.xpose.msk.msra.mxu0 %vm178_vm1, %v3323_v4  ;;  %5245 = vmatpush3.xpose.msk.msra.mxu1 %vm178_vm1, %v3393_v5 }
0x12d1   :  { %v3462_v10 = vpop.f32.mrb[38].mxu0  ;;  %v3532_v11 = vpop.f32.mrb[38].mxu1  ;;  %5249 = vmatprep.subr.mxu0 %v5679_v1  ;;  %5254 = vmatprep.subr.mxu1 %v5679_v1 }
0x12d2   :  { %v6201_v13 = vadd.f32 %v4824_v8, %v3462_v10  ;;  %v6203_v14 = vadd.f32 %v4825_v9, %v3532_v11  ;;  %v5231_v42 = vpop.f32.mrb[39].mxu0  ;;  %v5238_v15 = vpop.f32.mrb[39].mxu1 }
0x12d3   :  { %5242 = vmatmul.mubr.msk.f32.vlgmr.msra.gmra.mrb[40].mxu0 %vm178_vm1, %v3323_v4  ;;  %5247 = vmatmul.mubr.msk.f32.vlgmr.msra.gmra.mrb[40].mxu1 %vm178_vm1, %v3393_v5 }
0x12d4   :  { %5250 = vmatpush3.xpose.msk.msra.mxu0 %vm178_vm1, %v6201_v13  ;;  %5255 = vmatpush3.xpose.msk.msra.mxu1 %vm178_vm1, %v6203_v14 }
0x12d5   :  { %5251 = vmatprep.mubr.msk.f32.mxu0 %vm5678_vm0, %v5679_v1  ;;  %5256 = vmatprep.mubr.msk.f32.mxu1 %vm5678_vm0, %v5679_v1 }
0x12d6   :  { %5259 = vmatprep.subr.mxu0 %v5679_v1  ;;  %5264 = vmatprep.subr.mxu1 %v5679_v1 }
0x12d7   :  { %5252 = vmatmul.mubr.msk.f32.vlgmr.msra.gmra.mrb[42].mxu0 %vm178_vm1, %v6201_v13  ;;  %5257 = vmatmul.mubr.msk.f32.vlgmr.msra.gmra.mrb[42].mxu1 %vm178_vm1, %v6203_v14 }
0x12d8   :  { %5260 = vmatpush3.msra.mxu0 %v3323_v4  ;;  %5265 = vmatpush3.msra.mxu1 %v3393_v5 }
0x12d9   :  { %5261 = vmatprep.mubr.msk.f32.mxu0 %vm5678_vm0, %v5679_v1  ;;  %5266 = vmatprep.mubr.msk.f32.mxu1 %vm5678_vm0, %v5679_v1 }
0x12da   :  { %5269 = vmatprep.subr.mxu0 %v5679_v1  ;;  %5274 = vmatprep.subr.mxu1 %v5679_v1 }
0x13a6   :  { %v3605_v16 = vpop.f32.mrb[40].mxu0  ;;  %v3678_v17 = vpop.f32.mrb[40].mxu1 }
0x13a7   :  { %v3828_v18 = vmul.f32 0.25, %v3605_v16  ;;  %v3829_v19 = vmul.f32 0.25, %v3678_v17  ;;  %v5243_v21 = vpop.f32.mrb[41].mxu0  ;;  %v5248_v22 = vpop.f32.mrb[41].mxu1 }
0x13a9   :  { %v3833_v23 = vsel %vm5895_vm2, %v3829_v19, -1e+30  ;;  %v3832_v25 = vsel %vm5895_vm2, %v3828_v18, -1e+30 }
0x13aa   :  { %v3751_v26 = vpop.f32.mrb[42].mxu0  ;;  %v3824_v27 = vpop.f32.mrb[42].mxu1  ;;  %v3839_v28 = vsel %vm764_vm3, %v3833_v23, -inf  ;;  %v3836_v29 = vsel %vm764_vm3, %v3832_v25, -inf }
0x13ab   :  { %v3830_v30 = vmul.f32 0.25, %v3751_v26  ;;  %v3831_v31 = vmul.f32 0.25, %v3824_v27  ;;  %3840 = vmax.xlane.f32.xlu1 %v3839_v28  ;;  %v5258_v32 = vpop.f32.mrb[43].mxu1  ;;  %3837 = vmax.xlane.f32.xlu0 %v3836_v29  ;;  %v5253_v33 = vpop.f32.mrb[43].mxu0 }
0x13ad   :  { %v3835_v34 = vsel %vm5895_vm2, %v3831_v31, -1e+30  ;;  %v3834_v36 = vsel %vm5895_vm2, %v3830_v30, -1e+30 }
0x13ae   :  { %v3845_v37 = vsel %vm764_vm3, %v3835_v34, -inf  ;;  %v3842_v38 = vsel %vm764_vm3, %v3834_v36, -inf }
0x13af   :  { %3846 = vmax.xlane.f32.xlu1 %v3845_v37  ;;  %3843 = vmax.xlane.f32.xlu0 %v3842_v38 }
0x1438   :  { %v3841_v39 = vpop.xlane.xlu1 %3840  ;;  %v3838_v40 = vpop.xlane.xlu0 %3837 }
0x1439   :  { %v3849_v41 = vsub.f32 %v3833_v23, %v3841_v39  ;;  %v3848_v20 = vsub.f32 %v3832_v25, %v3838_v40 }
0x143b   :  { %v3854_v24 = vmul.f32 1.442695, %v3849_v41  ;;  %v3852_v44 = vmul.f32 1.442695, %v3848_v20 }
0x143c   :  { %v3847_v45 = vpop.xlane.xlu1 %3846  ;;  %v3844_v46 = vpop.xlane.xlu0 %3843 }
0x143d   :  { %5477 = vpow2.f32 %v3854_v24  ;;  %v3851_v47 = vsub.f32 %v3835_v34, %v3847_v45  ;;  %v3850_v48 = vsub.f32 %v3834_v36, %v3844_v46  ;;  %v3205_v45 = vld [vmem:[#allocation7 + $0x80] sm:$0xff]  ;;  %v3206_v46 = vld [vmem:[#allocation7 + $0x88] sm:$0xff] }
0x143e   :  { %5479 = vpow2.f32 %v3852_v44 }
0x143f   :  { %v3858_v35 = vmul.f32 1.442695, %v3851_v47  ;;  %v3856_v50 = vmul.f32 1.442695, %v3850_v48  ;;  %v3207_v47 = vld [vmem:[#allocation7 + $0x90] sm:$0xff]  ;;  %v5394_v48 = vpack.c.bf16 %v3206_v46, %v3205_v45 }
0x1440   :  { %v4849_v46 = vld [vmem:[%s6340_s6 + $0x2] ss:$0 sm:$0xff] }
0x1441   :  { %5481 = vpow2.f32 %v3858_v35  ;;  %v3208_v35 = vld [vmem:[#allocation7 + $0x98] sm:$0xff] }
0x1442   :  { %5483 = vpow2.f32 %v3856_v50  ;;  %v5397_v50 = vpack.c.bf16 %v3208_v35, %v3207_v47 }
0x1447   :  { %v5478_v51 = vpop.eup %5477 }
0x1448   :  { %v5480_v52 = vpop.eup %5479  ;;  %v3863_v53 = vsel %vm764_vm3, %v5478_v51, 0.0 }
0x1449   :  { %3864 = vadd.xlane.f32.xlu1 %v3863_v53  ;;  %v3860_v54 = vsel %vm764_vm3, %v5480_v52, 0.0 }
0x144a   :  { %3861 = vadd.xlane.f32.xlu0 %v3860_v54 }
0x144b   :  { %v5482_v12 = vpop.eup %5481 }
0x144c   :  { %v5484_v55 = vpop.eup %5483  ;;  %v3869_v56 = vsel %vm764_vm3, %v5482_v12, 0.0 }
0x144d   :  { %3870 = vadd.xlane.f32.xlu1 %v3869_v56  ;;  %v3866_v57 = vsel %vm764_vm3, %v5484_v55, 0.0 }
0x144e   :  { %3867 = vadd.xlane.f32.xlu0 %v3866_v57 }
0x14d6   :  { %v3865_v58 = vpop.xlane.xlu1 %3864 }
0x14d7   :  { %5485 = vrcp.f32 %v3865_v58  ;;  %v3862_v59 = vpop.xlane.xlu0 %3861 }
0x14d8   :  { %5487 = vrcp.f32 %v3862_v59 }
0x14da   :  { %v3871_v60 = vpop.xlane.xlu1 %3870 }
0x14db   :  { %5489 = vrcp.f32 %v3871_v60  ;;  %v3868_v61 = vpop.xlane.xlu0 %3867 }
0x14dc   :  { %5491 = vrcp.f32 %v3868_v61 }
0x14e1   :  { %v5486_v62 = vpop.eup %5485 }
0x14e2   :  { %v5488_v43 = vpop.eup %5487  ;;  %v3877_v49 = vmul.f32 %v5486_v62, %v5478_v51 }
0x14e3   :  { %v3876_v2 = vmul.f32 %v5488_v43, %v5480_v52  ;;  %v6276_v43 = vld [vmem:[%s6343_s9 + $0x2] ss:$0 sm:$0xff] }
0x14e4   :  { %5267 = vmatmul.mubr.msk.f32.vlgmr.msra.gmra.mrb[44].mxu1 %vm764_vm3, %v3877_v49 }
0x14e5   :  { %v5490_v3 = vpop.eup %5489  ;;  %5262 = vmatmul.mubr.msk.f32.vlgmr.msra.gmra.mrb[44].mxu0 %vm764_vm3, %v3876_v2  ;;  %5275 = vmatpush3.msra.mxu1 %v6203_v14 }
0x14e6   :  { %v5492_v4 = vpop.eup %5491  ;;  %v3879_v5 = vmul.f32 %v5490_v3, %v5482_v12  ;;  %5270 = vmatpush3.msra.mxu0 %v6201_v13  ;;  %5271 = vmatprep.mubr.msk.f32.mxu0 %vm5678_vm0, %v5679_v1  ;;  %v3211_v3 = vld [vmem:[#allocation7 + $0xb0] sm:$0xff] }
0x14e7   :  { %v3878_v6 = vmul.f32 %v5492_v4, %v5484_v55  ;;  %5276 = vmatprep.mubr.msk.f32.mxu1 %vm5678_vm0, %v5679_v1  ;;  %5393 = vmatprep.subr.bf16.mxu0 %v5677_v0  ;;  %v3212_v4 = vld [vmem:[#allocation7 + $0xb8] sm:$0xff] }
0x14e8   :  { %5277 = vmatmul.mubr.msk.f32.vlgmr.msra.gmra.mrb[46].mxu1 %vm764_vm3, %v3879_v5  ;;  %5396 = vmatprep.subr.bf16.mxu1 %v5677_v0 }
0x14e9   :  { %5272 = vmatmul.mubr.msk.f32.vlgmr.msra.gmra.mrb[46].mxu0 %vm764_vm3, %v3878_v6  ;;  %5290 = vmatprep.mubr.msk.f32.mxu1 %vm5678_vm0, %v5679_v1  ;;  %v6281_v6 = vld [vmem:[%s6344_s10 + $0x2] ss:$0 sm:$0xff] }
0x14ea   :  { %5283 = vmatprep.mubr.msk.f32.mxu0 %vm5678_vm0, %v5679_v1  ;;  %5395 = vmatpush3.bf16.msra.mxu0 %v5394_v48 }
0x14eb   :  { %5398 = vmatpush3.bf16.msra.mxu1 %v5397_v50  ;;  %5399 = vmatprep.subr.bf16.mxu0 %v5677_v0 }
0x14ec   :  { %5402 = vmatprep.subr.bf16.mxu1 %v5677_v0 }
0x15b7   :  { %v4022_v7 = vpop.f32.mrb[44].mxu1 }
0x15b8   :  { %v3949_v8 = vpop.f32.mrb[44].mxu0  ;;  %v4023_v9 = vadd.f32 %v4022_v7, %v6165_v63  ;;  %v5268_v10 = vpop.f32.mrb[45].mxu1  ;;  %v3209_v7 = vld [vmem:[#allocation7 + $0xa0] sm:$0xff] }
0x15b9   :  { %v3950_v11 = vadd.f32 %v3949_v8, %v6165_v63  ;;  %v5263_v13 = vpop.f32.mrb[45].mxu0  ;;  %v3210_v8 = vld [vmem:[#allocation7 + $0xa8] sm:$0xff] }
0x15ba   :  { %v4175_v14 = vsel %vm178_vm1, %v4023_v9, 0.0  ;;  %v5403_v13 = vpack.c.bf16 %v3212_v4, %v3211_v3 }
0x15bb   :  { %4176 = vadd.xlane.f32.xlu1 %v4175_v14  ;;  %v4168_v42 = vpop.f32.mrb[46].mxu1  ;;  %v4172_v15 = vsel %vm178_vm1, %v3950_v11, 0.0 }
0x15bc   :  { %v4169_v16 = vadd.f32 %v4168_v42, %v6165_v63  ;;  %4173 = vadd.xlane.f32.xlu0 %v4172_v15  ;;  %v4095_v17 = vpop.f32.mrb[46].mxu0  ;;  %v5278_v18 = vpop.f32.mrb[47].mxu1 }
0x15bd   :  { %v4096_v19 = vadd.f32 %v4095_v17, %v6165_v63  ;;  %v5273_v21 = vpop.f32.mrb[47].mxu0 }
0x15be   :  { %v4181_v22 = vsel %vm178_vm1, %v4169_v16, 0.0 }
0x15bf   :  { %4182 = vadd.xlane.f32.xlu1 %v4181_v22  ;;  %v4178_v23 = vsel %vm178_vm1, %v4096_v19, 0.0 }
0x15c0   :  { %4179 = vadd.xlane.f32.xlu0 %v4178_v23 }
0x1648   :  { %v4177_v25 = vpop.xlane.xlu1 %4176 }
0x1649   :  { %v4185_v26 = vmul.f32 0.0625, %v4177_v25  ;;  %v4174_v27 = vpop.xlane.xlu0 %4173  ;;  %v3216_v25 = vld [vmem:[#allocation8 + $0x20] sm:$0xff] }
0x164a   :  { %v4184_v28 = vmul.f32 0.0625, %v4174_v27 }
0x164b   :  { %v4189_v29 = vsub.f32 %v4023_v9, %v4185_v26  ;;  %v3217_v26 = vld [vmem:[#allocation8 + $0x28] sm:$0xff] }
0x164c   :  { %v4188_v30 = vsub.f32 %v3950_v11, %v4184_v28  ;;  %v4183_v31 = vpop.xlane.xlu1 %4182  ;;  %v5406_v27 = vpack.c.bf16 %v3217_v26, %v3216_v25 }
0x164d   :  { %v4187_v32 = vmul.f32 0.0625, %v4183_v31  ;;  %v4180_v33 = vpop.xlane.xlu0 %4179  ;;  %v4193_v34 = vmul.f32 %v4189_v29, %v4189_v29 }
0x164e   :  { %v4186_v36 = vmul.f32 0.0625, %v4180_v33  ;;  %v4192_v37 = vmul.f32 %v4188_v30, %v4188_v30 }
0x164f   :  { %v4191_v63 = vsub.f32 %v4169_v16, %v4187_v32  ;;  %v4199_v38 = vsel %vm178_vm1, %v4193_v34, 0.0  ;;  %v5400_v16 = vpack.c.bf16 %v3210_v8, %v3209_v7 }
0x1650   :  { %v4190_v39 = vsub.f32 %v4096_v19, %v4186_v36  ;;  %4200 = vadd.xlane.f32.xlu1 %v4199_v38  ;;  %v4196_v40 = vsel %vm178_vm1, %v4192_v37, 0.0 }
0x1651   :  { %4197 = vadd.xlane.f32.xlu0 %v4196_v40  ;;  %v4195_v41 = vmul.f32 %v4191_v63, %v4191_v63 }
0x1652   :  { %v4194_v20 = vmul.f32 %v4190_v39, %v4190_v39 }
0x1653   :  { %v4205_v24 = vsel %vm178_vm1, %v4195_v41, 0.0 }
0x1654   :  { %4206 = vadd.xlane.f32.xlu1 %v4205_v24  ;;  %v4202_v44 = vsel %vm178_vm1, %v4194_v20, 0.0  ;;  %v3221_v24 = vld [vmem:[#allocation10 + $0x20] sm:$0xff] }
0x1655   :  { %4203 = vadd.xlane.f32.xlu0 %v4202_v44  ;;  %v3222_v44 = vld [vmem:[#allocation10 + $0x28] sm:$0xff] }
0x1656   :  { %v5409_v45 = vpack.c.bf16 %v3222_v44, %v3221_v24 }
0x16dd   :  { %v4201_v51 = vpop.xlane.xlu1 %4200 }
0x16de   :  { %v4209_v52 = vmul.f32 0.0625, %v4201_v51  ;;  %v4198_v53 = vpop.xlane.xlu0 %4197  ;;  %v4851_v51 = vld [vmem:[#allocation11 + $0x2] ss:$0 sm:$0xff] }
0x16df   :  { %v4208_v54 = vmul.f32 0.0625, %v4198_v53 }
0x16e0   :  { %v4213_v12 = vadd.f32 1e-05, %v4209_v52 }
0x16e1   :  { %v4212_v55 = vadd.f32 1e-05, %v4208_v54  ;;  %v4207_v56 = vpop.xlane.xlu1 %4206 }
0x16e2   :  { %5493 = vrsqrt.f32 %v4213_v12  ;;  %v4211_v57 = vmul.f32 0.0625, %v4207_v56  ;;  %v4204_v58 = vpop.xlane.xlu0 %4203 }
0x16e3   :  { %5495 = vrsqrt.f32 %v4212_v55  ;;  %v4210_v59 = vmul.f32 0.0625, %v4204_v58 }
0x16e4   :  { %v4215_v60 = vadd.f32 1e-05, %v4211_v57 }
0x16e5   :  { %v4214_v61 = vadd.f32 1e-05, %v4210_v59 }
0x16e6   :  { %5497 = vrsqrt.f32 %v4215_v60 }
0x16e7   :  { %5499 = vrsqrt.f32 %v4214_v61 }
0x16ec   :  { %v5494_v62 = vpop.eup %5493 }
0x16ed   :  { %v5496_v49 = vpop.eup %5495  ;;  %v4221_v2 = vmul.f32 %v5494_v62, %v4189_v29 }
0x16ee   :  { %v4220_v5 = vmul.f32 %v5496_v49, %v4188_v30 }
0x16ef   :  { %v4231_v9 = vmul.f32 %v6276_v43, %v4221_v2 }
0x16f0   :  { %v5498_v10 = vpop.eup %5497  ;;  %v4230_v11 = vmul.f32 %v6276_v43, %v4220_v5 }
0x16f1   :  { %v5500_v14 = vpop.eup %5499  ;;  %v4223_v42 = vmul.f32 %v5498_v10, %v4191_v63  ;;  %v4241_v15 = vadd.f32 %v6281_v6, %v4231_v9 }
0x16f2   :  { %v4222_v17 = vmul.f32 %v5500_v14, %v4190_v39  ;;  %v4240_v18 = vadd.f32 %v6281_v6, %v4230_v11  ;;  %v4848_v39 = vld [vmem:[%s6338_s4 + $0x2] ss:$0 sm:$0xff]  ;;  %s5680_s4 = smov [#allocation13]  }
0x16f3   :  { %5291 = vmatmul.mubr.msk.f32.vlgmr.msra.gmra.mrb[48].mxu1 %vm178_vm1, %v4241_v15  ;;  %v4233_v19 = vmul.f32 %v6276_v43, %v4223_v42  ;;  %s4732_s6 = sshll.u32 %s5680_s4, 4  ;;  %s4733_s6 = int_to_ptr.vmem [resolvable:$true] %s4732_s6 }
0x16f4   :  { %5284 = vmatmul.mubr.msk.f32.vlgmr.msra.gmra.mrb[48].mxu0 %vm178_vm1, %v4240_v18  ;;  %5404 = vmatpush3.bf16.msra.mxu1 %v5403_v13  ;;  %v4232_v21 = vmul.f32 %v6276_v43, %v4222_v17  ;;  %s5635_s7 = scalar_lea.vmem %s4733_s6, 128  ;;  %p5640_p7 = scmp.lt.s32.totalorder %s4733_s6, %s4733_s6 }
0x16f5   :  { %5401 = vmatpush3.bf16.msra.mxu0 %v5400_v16  ;;  %5297 = vmatprep.mubr.msk.f32.mxu0 %vm5678_vm0, %v5679_v1  ;;  %v4243_v22 = vadd.f32 %v6281_v6, %v4233_v19  ;;  %p5636_p6 = scmp.ne.s32.totalorder %s4733_s6, %s5635_s7  ;;  %p5641_p8 = scmp.lt.s32.totalorder %s5635_s7, %s5635_s7 }
0x16f6   :  { %5304 = vmatprep.mubr.msk.f32.mxu1 %vm5678_vm0, %v5679_v1  ;;  %v4242_v23 = vadd.f32 %v6281_v6, %v4232_v21  ;;  %5405 = vmatprep.subr.bf16.mxu0 %v5677_v0 }
0x16f7   :  { %5305 = vmatmul.mubr.msk.f32.vlgmr.msra.gmra.mrb[50].mxu1 %vm178_vm1, %v4243_v22  ;;  %5408 = vmatprep.subr.bf16.mxu1 %v5677_v0  ;;  %p5642_p9 = por %p5641_p8, %p5640_p7 }
0x16f8   :  { %5298 = vmatmul.mubr.msk.f32.vlgmr.msra.gmra.mrb[50].mxu0 %vm178_vm1, %v4242_v23  ;;  %5318 = vmatprep.mubr.msk.f32.mxu1 %vm5678_vm0, %v5679_v1 }
0x16f9   :  { %5311 = vmatprep.mubr.msk.f32.mxu0 %vm5678_vm0, %v5679_v1  ;;  %5407 = vmatpush3.bf16.msra.mxu0 %v5406_v27  ;;  %p5643_p10 = pnand %p5642_p9, %p5636_p6 }
0x16fa   :  { %5410 = vmatpush3.bf16.msra.mxu1 %v5409_v45 }
0x17c6   :  { %v4386_v28 = vpop.f32.mrb[48].mxu1 }
0x17c7   :  { %v4313_v29 = vpop.f32.mrb[48].mxu0  ;;  %v4537_v30 = vsel %vm178_vm1, %v4386_v28, 0.0  ;;  %v5292_v31 = vpop.f32.mrb[49].mxu1 }
0x17c8   :  { %v4536_v32 = vsel %vm178_vm1, %v4313_v29, 0.0  ;;  %v5285_v0 = vpop.f32.mrb[49].mxu0 }
0x17c9   :  { %v4538_v33 = vadd.f32 %v4537_v30, %v4536_v32 }
0x17ca   :  { %v4532_v34 = vpop.f32.mrb[50].mxu1 }
0x17cb   :  { %v4459_v36 = vpop.f32.mrb[50].mxu0  ;;  %v5306_v37 = vpop.f32.mrb[51].mxu1  ;;  %v4541_v40 = vsel %vm178_vm1, %v4532_v34, 0.0 }
0x17cc   :  { %v4539_v63 = vsel %vm178_vm1, %v4459_v36, 0.0  ;;  %v5299_v38 = vpop.f32.mrb[51].mxu0 }
0x17cd   :  { %v4540_v1 = vadd.f32 %v4539_v63, %v4538_v33 }
0x17cf   :  { %v4542_v41 = vadd.f32 %v4541_v40, %v4540_v1 }
0x17d1   :  { %v4549_v20 = vadd.f32 %v4848_v39, %v4542_v41 }
0x17d3   :  { %5312 = vmatmul.mubr.msk.f32.vlgmr.msra.gmra.mrb[52].mxu0 %vm178_vm1, %v4549_v20 }
0x18a6   :  { %v4625_v47 = vpop.f32.mrb[52].mxu0 }
0x18a7   :  { %v4626_v48 = vadd.f32 %v4849_v46, %v4625_v47  ;;  %v5313_v35 = vpop.f32.mrb[53].mxu0 }
0x18a9   :  { %v4629_v50 = vmax.f32 %v4626_v48, 0.0 }
0x18ab   :  { %5319 = vmatmul.mubr.msk.f32.vlgmr.msra.gmra.mrb[52].mxu1 %vm178_vm1, %v4629_v50 }
0x197e   :  { %v4705_v52 = vpop.f32.mrb[52].mxu1 }
0x197f   :  { %v4706_v53 = vadd.f32 %v4851_v51, %v4705_v52  ;;  %v5320_v54 = vpop.f32.mrb[53].mxu1 }
0x1981   :  { %v4709_v12 = vadd.f32 %v4706_v53, %v4549_v20 }
0x1983   :  { %v4710_v55 = vsel %vm178_vm1, %v4709_v12, 0.0 }
0x1984   :  { %4711 = vadd.xlane.f32.xlu0 %v4710_v55 }
0x1a11   :  { %v4712_v56 = vpop.xlane.xlu0 %4711 }
0x1a12   :  { %v4713_v57 = vmul.f32 0.0625, %v4712_v56 }
0x1a14   :  { %v4714_v58 = vsub.f32 %v4709_v12, %v4713_v57 }
0x1a16   :  { %v4715_v59 = vmul.f32 %v4714_v58, %v4714_v58 }
0x1a18   :  { %v4716_v60 = vsel %vm178_vm1, %v4715_v59, 0.0 }
0x1a19   :  { %4717 = vadd.xlane.f32.xlu1 %v4716_v60 }
0x1aa6   :  { %v4718_v61 = vpop.xlane.xlu1 %4717 }
0x1aa7   :  { %v4719_v62 = vmul.f32 0.0625, %v4718_v61 }
0x1aa9   :  { %v4720_v49 = vadd.f32 1e-05, %v4719_v62 }
0x1aab   :  { %5501 = vrsqrt.f32 %v4720_v49 }
0x1ab5   :  { %v5502_v2 = vpop.eup %5501 }
0x1ab6   :  { %v4722_v3 = vmul.f32 %v5502_v2, %v4714_v58 }
0x1ab8   :  { %v4723_v4 = vmul.f32 %v6276_v43, %v4722_v3 }
0x1aba   :  { %v4724_v5 = vadd.f32 %v6281_v6, %v4723_v4 }
0x1abc   :  { %4725 = vst.msk [vmem:[#allocation13] sm:$0xff] %vm178_vm1, %v4724_v5 }
0x1abd   :  { %5646 = shalt.err (!%p5643_p10)
}
0x1abe   :  { %s5647_s22 = scalar_lea.hbm %s6345_s11, 128 }
0x1abf   :  { %p5648_p11 = scmp.ne.s32.totalorder %s6345_s11, %s5647_s22  ;;  %p5651_p12 = scmp.lt.u32.totalorder %s5647_s22, %s6345_s11 }
0x1ac1   :  { %p5653_p13 = pnand %p5651_p12, %p5648_p11 }
0x1ac3   :  { %5656 = shalt.err (!%p5653_p13)
}
0x1ac4   :  { %4735 = dma.vmem_to_hbm [thread:$0]  %s4733_s6, 128, %s6345_s11, [#allocation4]  }
0x1ac5   :  { %5665 = dma.done.wait [#allocation4], 128  }
0x1ac6   :  { %5666 = vsyncadd [#allocation4], 4294967168 }
0x1ac7   :  { %4739 = vsyncpa [#allocation3], 1 }
0x1ac8   :  { %4740 = vsyncpa [#allocation6], 1 }
0x1ac9   :  { %4741 = vsyncpa [#allocation9], 1 }
0x1aca   :  { %4742 = vsyncpa [#allocation12], 1 }
0x1acb   :  { %4743 = vsyncpa [#allocation4], 1 }

</bundles_post_ra>
